<compile_context>
chip_gen: v6e
topology: v6e:2x2x1
jax: 0.10.0
libtpu: 0.0.40
codegen_flags: <defaults>
</compile_context>

<pallas_src>
import jax
import jax.numpy as jnp
from jax.experimental import pallas as pl
from jax.experimental.pallas import tpu as pltpu


def _mlp_kernel(x_ref,
                w1_ref, b1_ref,
                w2_ref, b2_ref,
                w3_ref, b3_ref,
                w4_ref, b4_ref,
                w5_ref, b5_ref,
                o_ref):
    def layer(h, w_ref, b_ref, act):
        # Dot in the weight dtype (f32 or bf16) with f32 accumulation on the MXU.
        y = jnp.dot(h.astype(w_ref.dtype), w_ref[...],
                    preferred_element_type=jnp.float32)
        y = y + b_ref[...].astype(jnp.float32)  # bias add / activations stay f32
        return act(y) if act is not None else y

    relu = lambda v: jnp.maximum(v, 0.0)

    h = layer(x_ref[...], w1_ref, b1_ref, relu)
    h = layer(h, w2_ref, b2_ref, jax.nn.sigmoid)
    h = layer(h, w3_ref, b3_ref, relu)
    h = layer(h, w4_ref, b4_ref, jax.nn.sigmoid)
    out = layer(h, w5_ref, b5_ref, None)

    # Lane-dense (128-wide, padded) store -> unmasked vst.
    o_ref[...] = out.astype(o_ref.dtype)


def _choose_block_m(B, per_row_bytes, budget_bytes, max_tile=2048):
    """Largest multiple of 8 dividing B that fits the VMEM budget, preferring
    >=2 grid steps so the parallel batch axis can use both v7x TensorCores."""
    cap = max(8, budget_bytes // max(per_row_bytes, 1))
    cap = min(cap, max_tile)
    cands = [B] + [d for d in range(8, min(B, max_tile) + 1, 8) if B % d == 0]
    cands = sorted(set(cands))
    multi = [d for d in cands if (B // d) >= 2 and d <= cap]
    if multi:
        return max(multi)
    feas = [d for d in cands if d <= cap]
    return max(feas) if feas else min(cands)


def mlp_forward(x, params, *, block_m=None, use_bf16=False,
                vmem_budget_bytes=40 * 1024 * 1024):
    """x: (B, n_input) float32. params: list of (W_t (in,out), b (1,out))."""
    B, n_input = x.shape
    (w1, b1), (w2, b2), (w3, b3), (w4, b4), (w5, b5) = params
    n_hidden = w1.shape[1]
    n_output = w5.shape[1]

    # Pad the final layer to a lane-dense 128-wide output slab (zeros in the
    # padded columns -> padded outputs are exactly 0; sliced off afterwards).
    n_out_pad = max(128, ((n_output + 127) // 128) * 128)
    w5p = jnp.pad(w5, ((0, 0), (0, n_out_pad - n_output)))
    b5p = jnp.pad(b5, ((0, 0), (0, n_out_pad - n_output)))

    if use_bf16:
        x_in = x.astype(jnp.bfloat16)
        cast_w = lambda w: w.astype(jnp.bfloat16)   # bf16 MXU operands (v6e/v7x win)
    else:
        x_in = x
        cast_w = lambda w: w

    weights = [cast_w(w1), b1, cast_w(w2), b2, cast_w(w3), b3,
               cast_w(w4), b4, cast_w(w5p), b5p]

    if block_m is None:
        weight_bytes = 2 * sum(int(a.size) * a.dtype.itemsize for a in weights)
        # Per-row: double-buffered x tile + double-buffered (padded) out tile
        # + generous allowance for f32 intermediates.
        per_row = x_in.dtype.itemsize * 2 * n_input + 4 * (3 * n_out_pad + 6 * n_hidden)
        block_m = _choose_block_m(B, per_row,
                                  max(vmem_budget_bytes - weight_bytes, 1 << 20))
    assert B % block_m == 0, "batch must be divisible by block_m"
    grid = (B // block_m,)

    def build(single_buffer_weights):
        w_kwargs = dict(pipeline_mode=pl.Buffered(1)) if single_buffer_weights else {}

        def wspec(arr):
            # Constant index_map: parameter resident in VMEM for every step.
            return pl.BlockSpec(arr.shape, lambda i: (0, 0), **w_kwargs)

        in_specs = [pl.BlockSpec((block_m, n_input), lambda i: (i, 0))]
        in_specs += [wspec(a) for a in weights]
        out_spec = pl.BlockSpec((block_m, n_out_pad), lambda i: (i, 0))

        return pl.pallas_call(
            _mlp_kernel,
            out_shape=jax.ShapeDtypeStruct((B, n_out_pad), jnp.float32),
            grid_spec=pl.GridSpec(grid=grid, in_specs=in_specs, out_specs=out_spec),
            compiler_params=pltpu.CompilerParams(
                dimension_semantics=("parallel",),
                vmem_limit_bytes=48 * 1024 * 1024),   # headroom under v7x's 64 MiB
        )

    try:
        out_pad = jax.block_until_ready(build(True)(x_in, *weights))
    except Exception:
        # Fall back to default (double-buffered) weight specs if Buffered(1)
        # is not supported by this JAX version.
        out_pad = jax.block_until_ready(build(False)(x_in, *weights))

    return out_pad[:, :n_output]


def make_params(key, n_input, n_hidden, n_output):
    """Deterministic param init; weights stored pre-transposed as (in, out)."""
    dims = [(n_input, n_hidden), (n_hidden, n_hidden), (n_hidden, n_hidden),
            (n_hidden, n_hidden), (n_hidden, n_output)]
    params = []
    for (d_in, d_out) in dims:
        key, kw, kb = jax.random.split(key, 3)
        # Mimic nn.Linear default init: U(-1/sqrt(fan_in), 1/sqrt(fan_in))
        bound = 1.0 / jnp.sqrt(d_in)
        w = jax.random.uniform(kw, (d_in, d_out), jnp.float32, -bound, bound)
        b = jax.random.uniform(kb, (1, d_out), jnp.float32, -bound, bound)
        params.append((w, b))
    return params


def reference_forward(x, params):
    h = x
    acts = [jax.nn.relu, jax.nn.sigmoid, jax.nn.relu, jax.nn.sigmoid, None]
    for (w, b), act in zip(params, acts):
        h = h @ w + b
        if act is not None:
            h = act(h)
    return h


if __name__ == "__main__":
    n_input, n_hidden, n_output = 16, 32, 8
    batch = 64

    key = jax.random.PRNGKey(0)
    key, kx = jax.random.split(key)
    x = jax.random.normal(kx, (batch, n_input), jnp.float32)
    params = make_params(key, n_input, n_hidden, n_output)

    ref = reference_forward(x, params)

    # f32 path: exact semantics of the PyTorch module.
    out = jax.block_until_ready(mlp_forward(x, params))
    assert out.shape == (batch, n_output)
    assert jnp.allclose(out, ref, atol=1e-5, rtol=1e-5), "f32 mismatch vs reference"

    # bf16-MXU path (v6e/v7x throughput option): looser tolerance by design.
    out_bf16 = jax.block_until_ready(mlp_forward(x, params, use_bf16=True))
    assert out_bf16.shape == (batch, n_output)
    assert float(jnp.max(jnp.abs(out_bf16 - ref))) < 0.1, "bf16 path diverged"

    print("KERNEL_OK")
</pallas_src>

<mosaic_0001>
module attributes {stable_mosaic.version = 11 : i64} {
  func.func @_mlp_kernel(%arg0: i32, %arg1: memref<32x16xf32, #tpu.memory_space<vmem>>, %arg2: memref<16x32xf32, #tpu.memory_space<vmem>>, %arg3: memref<1x32xf32, #tpu.memory_space<vmem>>, %arg4: memref<32x32xf32, #tpu.memory_space<vmem>>, %arg5: memref<1x32xf32, #tpu.memory_space<vmem>>, %arg6: memref<32x32xf32, #tpu.memory_space<vmem>>, %arg7: memref<1x32xf32, #tpu.memory_space<vmem>>, %arg8: memref<32x32xf32, #tpu.memory_space<vmem>>, %arg9: memref<1x32xf32, #tpu.memory_space<vmem>>, %arg10: memref<32x128xf32, #tpu.memory_space<vmem>>, %arg11: memref<1x128xf32, #tpu.memory_space<vmem>>, %arg12: memref<32x128xf32, #tpu.memory_space<vmem>>) attributes {dimension_semantics = [#tpu.dimension_semantics<parallel>], iteration_bounds = array<i64: 2>, scalar_prefetch = 0 : i64, scratch_operands = 0 : i64, tpu.core_type = #tpu.core_type<tc>, window_params = [{transform_indices = @transform_0, window_bounds = array<i64: 32, 16>}, {pipeline_mode = #tpu.pipeline_mode<synchronous>, transform_indices = @transform_1, window_bounds = array<i64: 16, 32>}, {pipeline_mode = #tpu.pipeline_mode<synchronous>, transform_indices = @transform_2, window_bounds = array<i64: 1, 32>}, {pipeline_mode = #tpu.pipeline_mode<synchronous>, transform_indices = @transform_3, window_bounds = array<i64: 32, 32>}, {pipeline_mode = #tpu.pipeline_mode<synchronous>, transform_indices = @transform_4, window_bounds = array<i64: 1, 32>}, {pipeline_mode = #tpu.pipeline_mode<synchronous>, transform_indices = @transform_5, window_bounds = array<i64: 32, 32>}, {pipeline_mode = #tpu.pipeline_mode<synchronous>, transform_indices = @transform_6, window_bounds = array<i64: 1, 32>}, {pipeline_mode = #tpu.pipeline_mode<synchronous>, transform_indices = @transform_7, window_bounds = array<i64: 32, 32>}, {pipeline_mode = #tpu.pipeline_mode<synchronous>, transform_indices = @transform_8, window_bounds = array<i64: 1, 32>}, {pipeline_mode = #tpu.pipeline_mode<synchronous>, transform_indices = @transform_9, window_bounds = array<i64: 32, 128>}, {pipeline_mode = #tpu.pipeline_mode<synchronous>, transform_indices = @transform_10, window_bounds = array<i64: 1, 128>}, {transform_indices = @transform_11, window_bounds = array<i64: 32, 128>}]} {
    %c0 = arith.constant 0 : index
    %c0_0 = arith.constant 0 : index
    %0 = vector.load %arg1[%c0, %c0_0] : memref<32x16xf32, #tpu.memory_space<vmem>>, vector<32x16xf32>
    %c0_1 = arith.constant 0 : index
    %c0_2 = arith.constant 0 : index
    %1 = vector.load %arg2[%c0_1, %c0_2] : memref<16x32xf32, #tpu.memory_space<vmem>>, vector<16x32xf32>
    %cst = arith.constant dense<0.000000e+00> : vector<32x32xf32>
    %2 = tpu.matmul %0, %1, %cst {dimension_numbers = #tpu.dot_dimension_numbers<[1], [0], [0], [1], [0, 0, 1, 1], [], []>} : vector<32x16xf32>, vector<16x32xf32>, vector<32x32xf32> -> vector<32x32xf32>
    %c0_3 = arith.constant 0 : index
    %c0_4 = arith.constant 0 : index
    %3 = vector.load %arg3[%c0_3, %c0_4] : memref<1x32xf32, #tpu.memory_space<vmem>>, vector<1x32xf32>
    %4 = vector.broadcast %3 : vector<1x32xf32> to vector<32x32xf32>
    %5 = arith.addf %2, %4 : vector<32x32xf32>
    %cst_5 = arith.constant 0.000000e+00 : f32
    %6 = vector.broadcast %cst_5 : f32 to vector<32x32xf32>
    %7 = arith.maximumf %5, %6 : vector<32x32xf32>
    %c0_6 = arith.constant 0 : index
    %c0_7 = arith.constant 0 : index
    %8 = vector.load %arg4[%c0_6, %c0_7] : memref<32x32xf32, #tpu.memory_space<vmem>>, vector<32x32xf32>
    %cst_8 = arith.constant dense<0.000000e+00> : vector<32x32xf32>
    %9 = tpu.matmul %7, %8, %cst_8 {dimension_numbers = #tpu.dot_dimension_numbers<[1], [0], [0], [1], [0, 0, 1, 1], [], []>} : vector<32x32xf32>, vector<32x32xf32>, vector<32x32xf32> -> vector<32x32xf32>
    %c0_9 = arith.constant 0 : index
    %c0_10 = arith.constant 0 : index
    %10 = vector.load %arg5[%c0_9, %c0_10] : memref<1x32xf32, #tpu.memory_space<vmem>>, vector<1x32xf32>
    %11 = vector.broadcast %10 : vector<1x32xf32> to vector<32x32xf32>
    %12 = arith.addf %9, %11 : vector<32x32xf32>
    %13 = arith.negf %12 : vector<32x32xf32>
    %14 = math.exp %13 : vector<32x32xf32>
    %cst_11 = arith.constant 1.000000e+00 : f32
    %15 = vector.broadcast %cst_11 : f32 to vector<32x32xf32>
    %16 = arith.addf %15, %14 : vector<32x32xf32>
    %17 = arith.divf %15, %16 : vector<32x32xf32>
    %c0_12 = arith.constant 0 : index
    %c0_13 = arith.constant 0 : index
    %18 = vector.load %arg6[%c0_12, %c0_13] : memref<32x32xf32, #tpu.memory_space<vmem>>, vector<32x32xf32>
    %cst_14 = arith.constant dense<0.000000e+00> : vector<32x32xf32>
    %19 = tpu.matmul %17, %18, %cst_14 {dimension_numbers = #tpu.dot_dimension_numbers<[1], [0], [0], [1], [0, 0, 1, 1], [], []>} : vector<32x32xf32>, vector<32x32xf32>, vector<32x32xf32> -> vector<32x32xf32>
    %c0_15 = arith.constant 0 : index
    %c0_16 = arith.constant 0 : index
    %20 = vector.load %arg7[%c0_15, %c0_16] : memref<1x32xf32, #tpu.memory_space<vmem>>, vector<1x32xf32>
    %21 = vector.broadcast %20 : vector<1x32xf32> to vector<32x32xf32>
    %22 = arith.addf %19, %21 : vector<32x32xf32>
    %cst_17 = arith.constant 0.000000e+00 : f32
    %23 = vector.broadcast %cst_17 : f32 to vector<32x32xf32>
    %24 = arith.maximumf %22, %23 : vector<32x32xf32>
    %c0_18 = arith.constant 0 : index
    %c0_19 = arith.constant 0 : index
    %25 = vector.load %arg8[%c0_18, %c0_19] : memref<32x32xf32, #tpu.memory_space<vmem>>, vector<32x32xf32>
    %cst_20 = arith.constant dense<0.000000e+00> : vector<32x32xf32>
    %26 = tpu.matmul %24, %25, %cst_20 {dimension_numbers = #tpu.dot_dimension_numbers<[1], [0], [0], [1], [0, 0, 1, 1], [], []>} : vector<32x32xf32>, vector<32x32xf32>, vector<32x32xf32> -> vector<32x32xf32>
    %c0_21 = arith.constant 0 : index
    %c0_22 = arith.constant 0 : index
    %27 = vector.load %arg9[%c0_21, %c0_22] : memref<1x32xf32, #tpu.memory_space<vmem>>, vector<1x32xf32>
    %28 = vector.broadcast %27 : vector<1x32xf32> to vector<32x32xf32>
    %29 = arith.addf %26, %28 : vector<32x32xf32>
    %30 = arith.negf %29 : vector<32x32xf32>
    %31 = math.exp %30 : vector<32x32xf32>
    %cst_23 = arith.constant 1.000000e+00 : f32
    %32 = vector.broadcast %cst_23 : f32 to vector<32x32xf32>
    %33 = arith.addf %32, %31 : vector<32x32xf32>
    %34 = arith.divf %32, %33 : vector<32x32xf32>
    %c0_24 = arith.constant 0 : index
    %c0_25 = arith.constant 0 : index
    %35 = vector.load %arg10[%c0_24, %c0_25] : memref<32x128xf32, #tpu.memory_space<vmem>>, vector<32x128xf32>
    %cst_26 = arith.constant dense<0.000000e+00> : vector<32x128xf32>
    %36 = tpu.matmul %34, %35, %cst_26 {dimension_numbers = #tpu.dot_dimension_numbers<[1], [0], [0], [1], [0, 0, 1, 1], [], []>} : vector<32x32xf32>, vector<32x128xf32>, vector<32x128xf32> -> vector<32x128xf32>
    %c0_27 = arith.constant 0 : index
    %c0_28 = arith.constant 0 : index
    %37 = vector.load %arg11[%c0_27, %c0_28] : memref<1x128xf32, #tpu.memory_space<vmem>>, vector<1x128xf32>
    %38 = vector.broadcast %37 : vector<1x128xf32> to vector<32x128xf32>
    %39 = arith.addf %36, %38 : vector<32x128xf32>
    %c0_29 = arith.constant 0 : index
    %c0_30 = arith.constant 0 : index
    %40 = vector.load %arg12[%c0_29, %c0_30] : memref<32x128xf32, #tpu.memory_space<vmem>>, vector<32x128xf32>
    tpu.vector_store %arg12[%c0_29, %c0_30], %39 {strides = array<i32>} : memref<32x128xf32, #tpu.memory_space<vmem>>, vector<32x128xf32>,
    return
  }
  func.func @transform_0(%arg0: i32) -> (i32, i32) {
    %c0_i32 = arith.constant 0 : i32
    %c0_i32_0 = arith.constant 0 : i32
    return %arg0, %c0_i32 : i32, i32
  }
  func.func @transform_1(%arg0: i32) -> (i32, i32) {
    %c0_i32 = arith.constant 0 : i32
    %c0_i32_0 = arith.constant 0 : i32
    %c0_i32_1 = arith.constant 0 : i32
    return %c0_i32, %c0_i32_0 : i32, i32
  }
  func.func @transform_2(%arg0: i32) -> (i32, i32) {
    %c0_i32 = arith.constant 0 : i32
    %c0_i32_0 = arith.constant 0 : i32
    %c0_i32_1 = arith.constant 0 : i32
    return %c0_i32, %c0_i32_0 : i32, i32
  }
  func.func @transform_3(%arg0: i32) -> (i32, i32) {
    %c0_i32 = arith.constant 0 : i32
    %c0_i32_0 = arith.constant 0 : i32
    %c0_i32_1 = arith.constant 0 : i32
    return %c0_i32, %c0_i32_0 : i32, i32
  }
  func.func @transform_4(%arg0: i32) -> (i32, i32) {
    %c0_i32 = arith.constant 0 : i32
    %c0_i32_0 = arith.constant 0 : i32
    %c0_i32_1 = arith.constant 0 : i32
    return %c0_i32, %c0_i32_0 : i32, i32
  }
  func.func @transform_5(%arg0: i32) -> (i32, i32) {
    %c0_i32 = arith.constant 0 : i32
    %c0_i32_0 = arith.constant 0 : i32
    %c0_i32_1 = arith.constant 0 : i32
    return %c0_i32, %c0_i32_0 : i32, i32
  }
  func.func @transform_6(%arg0: i32) -> (i32, i32) {
    %c0_i32 = arith.constant 0 : i32
    %c0_i32_0 = arith.constant 0 : i32
    %c0_i32_1 = arith.constant 0 : i32
    return %c0_i32, %c0_i32_0 : i32, i32
  }
  func.func @transform_7(%arg0: i32) -> (i32, i32) {
    %c0_i32 = arith.constant 0 : i32
    %c0_i32_0 = arith.constant 0 : i32
    %c0_i32_1 = arith.constant 0 : i32
    return %c0_i32, %c0_i32_0 : i32, i32
  }
  func.func @transform_8(%arg0: i32) -> (i32, i32) {
    %c0_i32 = arith.constant 0 : i32
    %c0_i32_0 = arith.constant 0 : i32
    %c0_i32_1 = arith.constant 0 : i32
    return %c0_i32, %c0_i32_0 : i32, i32
  }
  func.func @transform_9(%arg0: i32) -> (i32, i32) {
    %c0_i32 = arith.constant 0 : i32
    %c0_i32_0 = arith.constant 0 : i32
    %c0_i32_1 = arith.constant 0 : i32
    return %c0_i32, %c0_i32_0 : i32, i32
  }
  func.func @transform_10(%arg0: i32) -> (i32, i32) {
    %c0_i32 = arith.constant 0 : i32
    %c0_i32_0 = arith.constant 0 : i32
    %c0_i32_1 = arith.constant 0 : i32
    return %c0_i32, %c0_i32_0 : i32, i32
  }
  func.func @transform_11(%arg0: i32) -> (i32, i32) {
    %c0_i32 = arith.constant 0 : i32
    %c0_i32_0 = arith.constant 0 : i32
    return %arg0, %c0_i32 : i32, i32
  }
}

module attributes {stable_mosaic.version = 11 : i64} {
  func.func @_mlp_kernel(%arg0: i32, %arg1: memref<32x16xf32, #tpu.memory_space<vmem>>, %arg2: memref<16x32xf32, #tpu.memory_space<vmem>>, %arg3: memref<1x32xf32, #tpu.memory_space<vmem>>, %arg4: memref<32x32xf32, #tpu.memory_space<vmem>>, %arg5: memref<1x32xf32, #tpu.memory_space<vmem>>, %arg6: memref<32x32xf32, #tpu.memory_space<vmem>>, %arg7: memref<1x32xf32, #tpu.memory_space<vmem>>, %arg8: memref<32x32xf32, #tpu.memory_space<vmem>>, %arg9: memref<1x32xf32, #tpu.memory_space<vmem>>, %arg10: memref<32x128xf32, #tpu.memory_space<vmem>>, %arg11: memref<1x128xf32, #tpu.memory_space<vmem>>, %arg12: memref<32x128xf32, #tpu.memory_space<vmem>>) attributes {dimension_semantics = [#tpu.dimension_semantics<parallel>], iteration_bounds = array<i64: 2>, scalar_prefetch = 0 : i64, scratch_operands = 0 : i64, tpu.core_type = #tpu.core_type<tc>, window_params = [{transform_indices = @transform_0, window_bounds = array<i64: 32, 16>}, {pipeline_mode = #tpu.pipeline_mode<synchronous>, transform_indices = @transform_1, window_bounds = array<i64: 16, 32>}, {pipeline_mode = #tpu.pipeline_mode<synchronous>, transform_indices = @transform_2, window_bounds = array<i64: 1, 32>}, {pipeline_mode = #tpu.pipeline_mode<synchronous>, transform_indices = @transform_3, window_bounds = array<i64: 32, 32>}, {pipeline_mode = #tpu.pipeline_mode<synchronous>, transform_indices = @transform_4, window_bounds = array<i64: 1, 32>}, {pipeline_mode = #tpu.pipeline_mode<synchronous>, transform_indices = @transform_5, window_bounds = array<i64: 32, 32>}, {pipeline_mode = #tpu.pipeline_mode<synchronous>, transform_indices = @transform_6, window_bounds = array<i64: 1, 32>}, {pipeline_mode = #tpu.pipeline_mode<synchronous>, transform_indices = @transform_7, window_bounds = array<i64: 32, 32>}, {pipeline_mode = #tpu.pipeline_mode<synchronous>, transform_indices = @transform_8, window_bounds = array<i64: 1, 32>}, {pipeline_mode = #tpu.pipeline_mode<synchronous>, transform_indices = @transform_9, window_bounds = array<i64: 32, 128>}, {pipeline_mode = #tpu.pipeline_mode<synchronous>, transform_indices = @transform_10, window_bounds = array<i64: 1, 128>}, {transform_indices = @transform_11, window_bounds = array<i64: 32, 128>}]} {
    %c0 = arith.constant 0 : index
    %c0_0 = arith.constant 0 : index
    %0 = vector.load %arg1[%c0, %c0_0] : memref<32x16xf32, #tpu.memory_space<vmem>>, vector<32x16xf32>
    %c0_1 = arith.constant 0 : index
    %c0_2 = arith.constant 0 : index
    %1 = vector.load %arg2[%c0_1, %c0_2] : memref<16x32xf32, #tpu.memory_space<vmem>>, vector<16x32xf32>
    %cst = arith.constant dense<0.000000e+00> : vector<32x32xf32>
    %2 = tpu.matmul %0, %1, %cst {dimension_numbers = #tpu.dot_dimension_numbers<[1], [0], [0], [1], [0, 0, 1, 1], [], []>} : vector<32x16xf32>, vector<16x32xf32>, vector<32x32xf32> -> vector<32x32xf32>
    %c0_3 = arith.constant 0 : index
    %c0_4 = arith.constant 0 : index
    %3 = vector.load %arg3[%c0_3, %c0_4] : memref<1x32xf32, #tpu.memory_space<vmem>>, vector<1x32xf32>
    %4 = vector.broadcast %3 : vector<1x32xf32> to vector<32x32xf32>
    %5 = arith.addf %2, %4 : vector<32x32xf32>
    %cst_5 = arith.constant 0.000000e+00 : f32
    %6 = vector.broadcast %cst_5 : f32 to vector<32x32xf32>
    %7 = arith.maximumf %5, %6 : vector<32x32xf32>
    %c0_6 = arith.constant 0 : index
    %c0_7 = arith.constant 0 : index
    %8 = vector.load %arg4[%c0_6, %c0_7] : memref<32x32xf32, #tpu.memory_space<vmem>>, vector<32x32xf32>
    %cst_8 = arith.constant dense<0.000000e+00> : vector<32x32xf32>
    %9 = tpu.matmul %7, %8, %cst_8 {dimension_numbers = #tpu.dot_dimension_numbers<[1], [0], [0], [1], [0, 0, 1, 1], [], []>} : vector<32x32xf32>, vector<32x32xf32>, vector<32x32xf32> -> vector<32x32xf32>
    %c0_9 = arith.constant 0 : index
    %c0_10 = arith.constant 0 : index
    %10 = vector.load %arg5[%c0_9, %c0_10] : memref<1x32xf32, #tpu.memory_space<vmem>>, vector<1x32xf32>
    %11 = vector.broadcast %10 : vector<1x32xf32> to vector<32x32xf32>
    %12 = arith.addf %9, %11 : vector<32x32xf32>
    %13 = arith.negf %12 : vector<32x32xf32>
    %14 = math.exp %13 : vector<32x32xf32>
    %cst_11 = arith.constant 1.000000e+00 : f32
    %15 = vector.broadcast %cst_11 : f32 to vector<32x32xf32>
    %16 = arith.addf %15, %14 : vector<32x32xf32>
    %17 = arith.divf %15, %16 : vector<32x32xf32>
    %c0_12 = arith.constant 0 : index
    %c0_13 = arith.constant 0 : index
    %18 = vector.load %arg6[%c0_12, %c0_13] : memref<32x32xf32, #tpu.memory_space<vmem>>, vector<32x32xf32>
    %cst_14 = arith.constant dense<0.000000e+00> : vector<32x32xf32>
    %19 = tpu.matmul %17, %18, %cst_14 {dimension_numbers = #tpu.dot_dimension_numbers<[1], [0], [0], [1], [0, 0, 1, 1], [], []>} : vector<32x32xf32>, vector<32x32xf32>, vector<32x32xf32> -> vector<32x32xf32>
    %c0_15 = arith.constant 0 : index
    %c0_16 = arith.constant 0 : index
    %20 = vector.load %arg7[%c0_15, %c0_16] : memref<1x32xf32, #tpu.memory_space<vmem>>, vector<1x32xf32>
    %21 = vector.broadcast %20 : vector<1x32xf32> to vector<32x32xf32>
    %22 = arith.addf %19, %21 : vector<32x32xf32>
    %cst_17 = arith.constant 0.000000e+00 : f32
    %23 = vector.broadcast %cst_17 : f32 to vector<32x32xf32>
    %24 = arith.maximumf %22, %23 : vector<32x32xf32>
    %c0_18 = arith.constant 0 : index
    %c0_19 = arith.constant 0 : index
    %25 = vector.load %arg8[%c0_18, %c0_19] : memref<32x32xf32, #tpu.memory_space<vmem>>, vector<32x32xf32>
    %cst_20 = arith.constant dense<0.000000e+00> : vector<32x32xf32>
    %26 = tpu.matmul %24, %25, %cst_20 {dimension_numbers = #tpu.dot_dimension_numbers<[1], [0], [0], [1], [0, 0, 1, 1], [], []>} : vector<32x32xf32>, vector<32x32xf32>, vector<32x32xf32> -> vector<32x32xf32>
    %c0_21 = arith.constant 0 : index
    %c0_22 = arith.constant 0 : index
    %27 = vector.load %arg9[%c0_21, %c0_22] : memref<1x32xf32, #tpu.memory_space<vmem>>, vector<1x32xf32>
    %28 = vector.broadcast %27 : vector<1x32xf32> to vector<32x32xf32>
    %29 = arith.addf %26, %28 : vector<32x32xf32>
    %30 = arith.negf %29 : vector<32x32xf32>
    %31 = math.exp %30 : vector<32x32xf32>
    %cst_23 = arith.constant 1.000000e+00 : f32
    %32 = vector.broadcast %cst_23 : f32 to vector<32x32xf32>
    %33 = arith.addf %32, %31 : vector<32x32xf32>
    %34 = arith.divf %32, %33 : vector<32x32xf32>
    %c0_24 = arith.constant 0 : index
    %c0_25 = arith.constant 0 : index
    %35 = vector.load %arg10[%c0_24, %c0_25] : memref<32x128xf32, #tpu.memory_space<vmem>>, vector<32x128xf32>
    %cst_26 = arith.constant dense<0.000000e+00> : vector<32x128xf32>
    %36 = tpu.matmul %34, %35, %cst_26 {dimension_numbers = #tpu.dot_dimension_numbers<[1], [0], [0], [1], [0, 0, 1, 1], [], []>} : vector<32x32xf32>, vector<32x128xf32>, vector<32x128xf32> -> vector<32x128xf32>
    %c0_27 = arith.constant 0 : index
    %c0_28 = arith.constant 0 : index
    %37 = vector.load %arg11[%c0_27, %c0_28] : memref<1x128xf32, #tpu.memory_space<vmem>>, vector<1x128xf32>
    %38 = vector.broadcast %37 : vector<1x128xf32> to vector<32x128xf32>
    %39 = arith.addf %36, %38 : vector<32x128xf32>
    %c0_29 = arith.constant 0 : index
    %c0_30 = arith.constant 0 : index
    %40 = vector.load %arg12[%c0_29, %c0_30] : memref<32x128xf32, #tpu.memory_space<vmem>>, vector<32x128xf32>
    tpu.vector_store %arg12[%c0_29, %c0_30], %39 {strides = array<i32>} : memref<32x128xf32, #tpu.memory_space<vmem>>, vector<32x128xf32>,
    return
  }
  func.func @transform_0(%arg0: i32) -> (i32, i32) {
    %c0_i32 = arith.constant 0 : i32
    %c0_i32_0 = arith.constant 0 : i32
    return %arg0, %c0_i32 : i32, i32
  }
  func.func @transform_1(%arg0: i32) -> (i32, i32) {
    %c0_i32 = arith.constant 0 : i32
    %c0_i32_0 = arith.constant 0 : i32
    %c0_i32_1 = arith.constant 0 : i32
    return %c0_i32, %c0_i32_0 : i32, i32
  }
  func.func @transform_2(%arg0: i32) -> (i32, i32) {
    %c0_i32 = arith.constant 0 : i32
    %c0_i32_0 = arith.constant 0 : i32
    %c0_i32_1 = arith.constant 0 : i32
    return %c0_i32, %c0_i32_0 : i32, i32
  }
  func.func @transform_3(%arg0: i32) -> (i32, i32) {
    %c0_i32 = arith.constant 0 : i32
    %c0_i32_0 = arith.constant 0 : i32
    %c0_i32_1 = arith.constant 0 : i32
    return %c0_i32, %c0_i32_0 : i32, i32
  }
  func.func @transform_4(%arg0: i32) -> (i32, i32) {
    %c0_i32 = arith.constant 0 : i32
    %c0_i32_0 = arith.constant 0 : i32
    %c0_i32_1 = arith.constant 0 : i32
    return %c0_i32, %c0_i32_0 : i32, i32
  }
  func.func @transform_5(%arg0: i32) -> (i32, i32) {
    %c0_i32 = arith.constant 0 : i32
    %c0_i32_0 = arith.constant 0 : i32
    %c0_i32_1 = arith.constant 0 : i32
    return %c0_i32, %c0_i32_0 : i32, i32
  }
  func.func @transform_6(%arg0: i32) -> (i32, i32) {
    %c0_i32 = arith.constant 0 : i32
    %c0_i32_0 = arith.constant 0 : i32
    %c0_i32_1 = arith.constant 0 : i32
    return %c0_i32, %c0_i32_0 : i32, i32
  }
  func.func @transform_7(%arg0: i32) -> (i32, i32) {
    %c0_i32 = arith.constant 0 : i32
    %c0_i32_0 = arith.constant 0 : i32
    %c0_i32_1 = arith.constant 0 : i32
    return %c0_i32, %c0_i32_0 : i32, i32
  }
  func.func @transform_8(%arg0: i32) -> (i32, i32) {
    %c0_i32 = arith.constant 0 : i32
    %c0_i32_0 = arith.constant 0 : i32
    %c0_i32_1 = arith.constant 0 : i32
    return %c0_i32, %c0_i32_0 : i32, i32
  }
  func.func @transform_9(%arg0: i32) -> (i32, i32) {
    %c0_i32 = arith.constant 0 : i32
    %c0_i32_0 = arith.constant 0 : i32
    %c0_i32_1 = arith.constant 0 : i32
    return %c0_i32, %c0_i32_0 : i32, i32
  }
  func.func @transform_10(%arg0: i32) -> (i32, i32) {
    %c0_i32 = arith.constant 0 : i32
    %c0_i32_0 = arith.constant 0 : i32
    %c0_i32_1 = arith.constant 0 : i32
    return %c0_i32, %c0_i32_0 : i32, i32
  }
  func.func @transform_11(%arg0: i32) -> (i32, i32) {
    %c0_i32 = arith.constant 0 : i32
    %c0_i32_0 = arith.constant 0 : i32
    return %arg0, %c0_i32 : i32, i32
  }
}

</mosaic_0001>

<bundles_post_ra>
// kernel: tpu_custom_call.1
= control target key start
LH: loop header
LB: loop body
LE: loop exit
PB: predicated region body
PF: predicated region fallthrough
CT: control target
= control target key end

     0   :  { %s2059_s0 = inlined_call_operand.vmem [shape: f32[64,16], index: 0, kind: input, shape index: {}]   ;;  %s2060_s1 = inlined_call_operand.hbm [shape: f32[16,32], index: 1, kind: input, shape index: {}]   ;;  %s2061_s2 = inlined_call_operand.hbm [shape: f32[1,32], index: 2, kind: input, shape index: {}]   ;;  %s2062_s3 = inlined_call_operand.vmem [shape: f32[32,32], index: 3, kind: input, shape index: {}]   ;;  %s2063_s4 = inlined_call_operand.hbm [shape: f32[1,32], index: 4, kind: input, shape index: {}]   ;;  %s2064_s5 = inlined_call_operand.vmem [shape: f32[32,32], index: 5, kind: input, shape index: {}]   ;;  %s2065_s6 = inlined_call_operand.hbm [shape: f32[1,32], index: 6, kind: input, shape index: {}]   ;;  %s2066_s7 = inlined_call_operand.hbm [shape: f32[32,32], index: 7, kind: input, shape index: {}]   ;;  %s2067_s8 = inlined_call_operand.hbm [shape: f32[1,32], index: 8, kind: input, shape index: {}]   ;;  %s2068_s9 = inlined_call_operand.vmem [shape: f32[32,128], index: 9, kind: input, shape index: {}]   ;;  %s2069_s10 = inlined_call_operand.vmem [shape: f32[1,128], index: 10, kind: input, shape index: {}]   ;;  %s2070_s11 = inlined_call_operand.hbm [shape: f32[64,128], index: 11, kind: output, shape index: {}]  }
   0x1   :  { %2075 = sst [smem:[#allocation21_spill]] %s2061_s2 }
   0x2   :  { %2076 = sst [smem:[#allocation22_spill]] %s2065_s6 }
   0x3   :  { %16 = vsyncpa [#allocation3], 0 }
   0x4   :  { %17 = vsyncpa [#allocation6], 0 }
   0x5   :  { %18 = vsyncpa [#allocation9], 0 }
   0x6   :  { %19 = vsyncpa [#allocation12], 0 }
   0x7   :  { %20 = vsyncpa [#allocation4], 0 }
   0x8   :  { %22 = vsyncpa [#allocation4 + $0x1], 0  ;;  %s1811_s17 = smov 0   ;;  %s1813_s18 = smov 0  }
   0x9   :  { %s1815_s19 = smov 0   ;;  %s1817_s20 = smov 0  }
   0xa LB: > { %2077 = sst [smem:[#allocation19_spill]] %s1734_s19  ;;  %s1832_s21 = sadd.s32 4294967295, %s1738_s20   ;;  %s1738_s20 = sphi %s1817_s20, %s2101_s20   ;;  %s1734_s19 = sphi %s1815_s19, %s2098_s19   ;;  %s1730_s18 = sphi %s1813_s18, %s2100_s18   ;;  %s1726_s17 = sphi %s1811_s17, %s2099_s17  }
   0xb   : > { %s1208_s22 = sadd.s32 4294967294, %s1738_s20   ;;  %s1836_s23 = sadd.s32 1, %s1738_s20  }
   0xc   : > { %s271_s24 = sadd.s32 1, %s1734_s19  ;;  %s268_s25 = ssub.s32 %s1738_s20, %s1836_s23 }
   0xd   : > { %p281_p0 = scmp.ne.s32.totalorder %s1734_s19, %s1730_s18  ;;  %p269_p1 = scmp.eq.s32.totalorder %s268_s25, 0 }
   0xe   : > { %p282_p2 = scmp.eq.s32.totalorder %s1832_s21, 1  ;;  %p287_p3 = scmp.ne.s32.totalorder %s1730_s18, %s1726_s17 }
   0xf   : > { %p288_p4 = scmp.eq.s32.totalorder %s1208_s22, 1  ;;  %p1209_p7 = scmp.ge.s32.totalorder %s1738_s20, 1 }
  0x10   : > { %s1847_s26 = scalar_select %p269_p1, %s1734_s19, %s271_s24  }
  0x11   : > { %p1849_p5 = por %p282_p2, %p281_p0  ;;  %p1853_p6 = por %p288_p4, %p287_p3 }
  0x12   : > { %2078 = sst [smem:[#allocation20_spill]] %s1847_s26  ;;  %p295_p8 = scmp.lt.s32.totalorder %s1738_s20, 3 }
  0x13   : > { %s2079_s27 = scalar_select %p1849_p5, 1, 0 }
  0x14   : > { %s2080_s28 = scalar_select %p1853_p6, 1, 0 }
  0x15   : > { %p2071_p9 = scmp.eq.s32.totalorder %s1832_s21, 0  ;;  %p1860_p10 = pnand %p1209_p7, %p295_p8 }
  0x16   : > { %s1740_s30 = smov [#allocation5]   ;;  %s1741_s13 = smov [#allocation8]  }
  0x17   : > { %s2081_s29 = scalar_select %p1860_p10, 1, 0 }
  0x18   : > { %s321_s12 = sshll.u32 %s1740_s30, 4  ;;  %p1396_p11 = pneg %p1860_p10  ;;  %s322_s12 = int_to_ptr.vmem [resolvable:$true] %s321_s12 }
  0x19   : > { %s349_s14 = sshll.u32 %s1741_s13, 4  ;;  %s1742_s16 = smov [#allocation2]   ;;  %s350_s14 = int_to_ptr.vmem [resolvable:$true] %s349_s14 }
  0x1a   : > { %p1868_p12 = pnand %p2071_p9, %p1396_p11  ;;  %s307_s22 = sshll.u32 %s1742_s16, 4  ;;  %s1872_s22 = int_to_ptr.vmem [resolvable:$true] %s307_s22 }
  0x1b   : > { %s1517_s25 = scalar_lea.vmem %s322_s12, 16  ;;  %s1524_s30 = scalar_lea.vmem %s322_s12, 32 }
  0x1c   : > { %p1876_p13 = pneg %p1868_p12  ;;  %p1518_p0 = scmp.ne.s32.totalorder %s322_s12, %s1517_s25 }
  0x1d   : > { %p1525_p3 = scmp.lt.s32.totalorder %s322_s12, %s322_s12  ;;  %p1526_p4 = scmp.lt.s32.totalorder %s1524_s30, %s1517_s25 }
  0x1e   : > { %p1520_p1 = pnand %p1518_p0, %p1876_p13 }
  0x1f   : > { %p1527_p7 = por %p1526_p4, %p1525_p3 }
  0x20   : > { %p1521_p2 = pneg %p1520_p1 }
  0x22   : > { %p1528_p8 = pnand %p1527_p7, %p1521_p2 }
  0x24   : > { %1531 = shalt.err (!%p1528_p8)
}
  0x25   : > { %s2084_s2 = sld [smem:[#allocation21_spill]]  ;;  %s1543_s26 = scalar_lea.vmem %s350_s14, 16 }
  0x26   : > { %p1544_p11 = scmp.ne.s32.totalorder %s350_s14, %s1543_s26  ;;  %s1550_s19 = scalar_lea.vmem %s350_s14, 32 }
  0x27   : > { %p1551_p0 = scmp.lt.s32.totalorder %s350_s14, %s350_s14  ;;  %p1552_p1 = scmp.lt.s32.totalorder %s1550_s19, %s1543_s26 }
  0x28   : > { %p1546_p9 = pnand %p1544_p11, %p1876_p13 }
  0x29   : > { %p1553_p5 = por %p1552_p1, %p1551_p0 }
  0x2a   : > { %p1547_p6 = pneg %p1546_p9 }
  0x2b   : > { %1402 = dma.hbm_to_vmem [thread:$0]  (!%p1868_p12), %s2084_s2, 16, %s322_s12, [#allocation6]  }
  0x2c   : > { %p1554_p10 = pnand %p1553_p5, %p1547_p6 }
  0x2e   : > { %1557 = shalt.err (!%p1554_p10)
}
  0x2f   : > { %s2085_s6 = sld [smem:[#allocation22_spill]]  ;;  %s1569_s12 = scalar_lea.vmem %s1872_s22, 256 }
  0x30   : > { %p1570_p2 = scmp.ne.s32.totalorder %s1872_s22, %s1569_s12  ;;  %p1577_p4 = scmp.lt.s32.totalorder %s1872_s22, %s1872_s22 }
  0x31   : > { %p1578_p7 = scmp.lt.s32.totalorder %s1569_s12, %s1569_s12 }
  0x32   : > { %p1572_p9 = pnand %p1570_p2, %p1876_p13 }
  0x33   : > { %p1579_p5 = por %p1578_p7, %p1577_p4 }
  0x34   : > { %p1573_p3 = pneg %p1572_p9 }
  0x35   : > { %1408 = dma.hbm_to_vmem [thread:$0]  (!%p1868_p12), %s2085_s6, 16, %s350_s14, [#allocation9]  }
  0x36   : > { %p1580_p6 = pnand %p1579_p5, %p1573_p3 }
  0x38   : > { %1583 = shalt.err (!%p1580_p6)
}
  0x39   : > { %s1743_s19 = smov 128   ;;  %s1744_s26 = smov 8  }
  0x3a   : > { %1399 = dma.hbm_to_vmem [thread:$0]  (!%p1868_p12), %s2060_s1, 256, %s1872_s22, [#allocation3], %s1743_s19, %s1743_s19, %s1744_s26  }
  0x3b   : > { %s1745_s16 = smov [#allocation7]   ;;  %s1746_s30 = smov [#allocation10]  }
  0x3c   : > { %s335_s25 = sshll.u32 %s1745_s16, 4  ;;  %s359_s12 = sshll.u32 %s1746_s30, 4  ;;  %s336_s25 = int_to_ptr.vmem [resolvable:$true] %s335_s25  ;;  %s360_s12 = int_to_ptr.vmem [resolvable:$true] %s359_s12 }
  0x3d   : > { %s1595_s2 = scalar_lea.vmem %s336_s25, 16  ;;  %s1602_s6 = scalar_lea.vmem %s336_s25, 32 }
  0x3e   : > { %p1596_p10 = scmp.ne.s32.totalorder %s336_s25, %s1595_s2  ;;  %p1603_p0 = scmp.lt.s32.totalorder %s336_s25, %s336_s25 }
  0x3f   : > { %p1604_p1 = scmp.lt.s32.totalorder %s1602_s6, %s1595_s2 }
  0x40   : > { %p1598_p8 = pnand %p1596_p10, %p1876_p13 }
  0x41   : > { %p1605_p2 = por %p1604_p1, %p1603_p0 }
  0x42   : > { %p1599_p11 = pneg %p1598_p8 }
  0x44   : > { %p1606_p9 = pnand %p1605_p2, %p1599_p11 }
  0x46   : > { %1609 = shalt.err (!%p1606_p9)
}
  0x47   : > { %1405 = dma.hbm_to_vmem [thread:$0]  (!%p1868_p12), %s2063_s4, 16, %s336_s25, [#allocation6]  }
  0x48   : > { %s1621_s13 = scalar_lea.vmem %s360_s12, 512  ;;  %p1629_p5 = scmp.lt.s32.totalorder %s360_s12, %s360_s12 }
  0x49   : > { %p1622_p3 = scmp.ne.s32.totalorder %s360_s12, %s1621_s13  ;;  %p1630_p6 = scmp.lt.s32.totalorder %s1621_s13, %s1621_s13 }
  0x4b   : > { %p1624_p4 = pnand %p1622_p3, %p1876_p13  ;;  %p1631_p10 = por %p1630_p6, %p1629_p5 }
  0x4d   : > { %p1625_p7 = pneg %p1624_p4 }
  0x4f   : > { %p1632_p8 = pnand %p1631_p10, %p1625_p7 }
  0x51   : > { %1635 = shalt.err (!%p1632_p8)
}
  0x52   : > { %1411 = dma.hbm_to_vmem [thread:$0]  (!%p1868_p12), %s2066_s7, 512, %s360_s12, [#allocation9], %s1743_s19, %s1743_s19, %s1744_s26  }
  0x53   : > { %s1747_s16 = smov [#allocation11]  }
  0x54   : > { %s373_s25 = sshll.u32 %s1747_s16, 4  ;;  %s374_s25 = int_to_ptr.vmem [resolvable:$true] %s373_s25 }
  0x55   : > { %s1647_s30 = scalar_lea.vmem %s374_s25, 16  ;;  %s1654_s14 = scalar_lea.vmem %s374_s25, 32 }
  0x56   : > { %p1648_p11 = scmp.ne.s32.totalorder %s374_s25, %s1647_s30  ;;  %p1655_p2 = scmp.lt.s32.totalorder %s374_s25, %s374_s25 }
  0x57   : > { %p1656_p9 = scmp.lt.s32.totalorder %s1654_s14, %s1647_s30 }
  0x58   : > { %p1650_p0 = pnand %p1648_p11, %p1876_p13 }
  0x59   : > { %p1657_p3 = por %p1656_p9, %p1655_p2 }
  0x5a   : > { %p1651_p1 = pneg %p1650_p0 }
  0x5c   : > { %p1658_p4 = pnand %p1657_p3, %p1651_p1 }
  0x5e   : > { %1661 = shalt.err (!%p1658_p4)
}
  0x5f   : > { %1414 = dma.hbm_to_vmem [thread:$0]  (!%p1868_p12), %s2067_s8, 16, %s374_s25, [#allocation12]  }
  0x60   : > { %p2086_p7 = scmp.ne.s32.totalorder %s2081_s29, 0 }
  0x61   : > { %p2087_p5 = scmp.eq.s32.totalorder (!%p2086_p7), %s1832_s21, 0 }
  0x62   : > { %401 = sbr.rel (%p2086_p7) target bundleno = 1196 (0x4ac), region = 64 }
  0x67   : > { %1705 = dma.done.wait (%p2087_p5), [#allocation3], 256   ;;  %p2088_p13 = pmov %p2087_p5 }
  0x68   : > { %p2089_p6 = pmov %p2087_p5 }
  0x69   : > { %1707 = vsyncadd (%p2088_p13), [#allocation3], 4294967040 }
  0x6a   : > { %1709 = dma.done.wait (%p2089_p6), [#allocation6], 32   ;;  %p2090_p10 = pmov %p2087_p5 }
  0x6b   : > { %p2091_p8 = pmov %p2087_p5 }
  0x6c   : > { %1711 = vsyncadd (%p2090_p10), [#allocation6], 4294967264 }
  0x6d   : > { %1713 = dma.done.wait (%p2091_p8), [#allocation9], 528   ;;  %p2092_p12 = pmov %p2087_p5 }
  0x6e   : > { %p2093_p11 = pmov %p2087_p5 }
  0x6f   : > { %1715 = vsyncadd (%p2092_p12), [#allocation9], 4294966768 }
  0x70   : > { %1717 = dma.done.wait (%p2093_p11), [#allocation12], 16   ;;  %p2094_p0 = pmov %p2087_p5 }
  0x71   : > { %s1225_s29 = sshll.u32 %s1832_s21, 2  ;;  %vm481_vm0 = vcmask 130048   ;;  %v473_v0 = vld [vmem:[#allocation2 + $0x8] sm:$0xff]  ;;  %v472_v1 = vld [vmem:[#allocation2] sm:$0xff]  ;;  %v586_v6 = vld [vmem:[%s2062_s3 + $0x18] sm:$0xff]  ;;  %vm594_vm1 = vcmask 261120  }
  0x72   : > { %1719 = vsyncadd (%p2094_p0), [#allocation12], 4294967280  ;;  %p462_p1 = scmp.lt.s32.totalorder %s1225_s29, 7  ;;  %1304 = vmatprep.subr.mxu0 %v473_v0  ;;  %1314 = vmatprep.subr.mxu1 %v586_v6  ;;  %v585_v7 = vld [vmem:[%s2062_s3 + $0x10] sm:$0xff]  ;;  %v584_v8 = vld [vmem:[%s2062_s3 + $0x8] sm:$0xff]  ;;  %s1265_s6 = sshll.u32 %s1832_s21, 9 }
  0x73   : > { %1305 = vmatpush3.msra.mxu0 %v473_v0  ;;  %1315 = vmatpush3.msra.mxu1 %v586_v6  ;;  %v583_v9 = vld [vmem:[%s2062_s3] sm:$0xff]  ;;  %v1227_v10 = vld [vmem:[#allocation5] ss:$0 sm:$0xff]  ;;  %v719_v23 = vld [vmem:[%s2064_s5 + $0x18] sm:$0xff]  ;;  %s2017_s30 = scalar_lea.hbm %s2070_s11, %s1265_s6  ;;  %p2095_p9 = scmp.ne.s32.totalorder %s2079_s27, 0 }
  0x74   : > { %s2103_s29 = smov (!%p462_p1, %s1225_s29), 7  ;;  %1306 = vmatprep.subr.mxu0 %v472_v1  ;;  %1316 = vmatprep.subr.mxu1 %v585_v7  ;;  %v718_v24 = vld [vmem:[%s2064_s5 + $0x10] sm:$0xff]  ;;  %v717_v25 = vld [vmem:[%s2064_s5 + $0x8] sm:$0xff]  ;;  %v716_v26 = vld [vmem:[%s2064_s5] sm:$0xff]  ;;  %s1748_s22 = smov [#allocation13]  }
  0x75   : > { %s1226_s15 = sshll.u32 %s2103_s29, 3  ;;  %1307 = vmatpush3.msra.mxu0 %v472_v1  ;;  %1317 = vmatpush3.msra.mxu1 %v585_v7  ;;  %v831_v27 = vld [vmem:[#allocation10 + $0x18] sm:$0xff]  ;;  %v830_v53 = vld [vmem:[#allocation10 + $0x10] sm:$0xff]  ;;  %v829_v54 = vld [vmem:[#allocation10 + $0x8] sm:$0xff]  ;;  %s1666_s13 = sshll.u32 %s1748_s22, 4  ;;  %s1667_s13 = int_to_ptr.vmem [resolvable:$false] %s1666_s13 }
  0x76   : > { %s465_s26 = scalar_lea.vmem %s2059_s0, %s1226_s15  ;;  %1318 = vmatprep.subr.mxu1 %v584_v8  ;;  %1328 = vmatprep.subr.mxu0 %v719_v23  ;;  %v1232_v28 = vld [vmem:[#allocation7] ss:$0 sm:$0xff]  ;;  %v828_v55 = vld [vmem:[#allocation10] sm:$0xff]  ;;  %v1241_v56 = vld [vmem:[#allocation8] ss:$0 sm:$0xff]  ;;  %s458_s15 = sand.u32 1, %s1730_s18  }
  0x77   : > { %v468_v2 = vld [vmem:[%s465_s26] sm:$0xff]  ;;  %v469_v3 = vld [vmem:[%s465_s26 + $0x8] sm:$0xff]  ;;  %v470_v4 = vld [vmem:[%s465_s26 + $0x10] sm:$0xff]  ;;  %1319 = vmatpush3.msra.mxu1 %v584_v8  ;;  %s1224_s24 = sshll.u32 %s458_s15, 5  ;;  %s2019_s14 = scalar_lea.sflag [#allocation4], %s458_s15 }
  0x78   : > { %1308 = vmatprep.mubr.msk.f32.mxu0 %vm481_vm0, %v468_v2  ;;  %v471_v5 = vld [vmem:[%s465_s26 + $0x18] sm:$0xff]  ;;  %1320 = vmatprep.subr.mxu1 %v583_v9  ;;  %v962_v6 = vld [vmem:[%s2068_s9 + $0x10] sm:$0xff]  ;;  %v961_v7 = vld [vmem:[%s2068_s9 + $0x8] sm:$0xff]  ;;  %s460_s12 = scalar_lea.vmem [#allocation13], %s1224_s24  ;;  %s1668_s29 = scalar_lea.vmem %s1667_s13, 1024 }
  0x79   : > { %1309 = vmatmul.mubr.msk.f32.vlgmr.msra.gmra.mxu0 %vm481_vm0, %v469_v3  ;;  %1321 = vmatpush3.msra.mxu1 %v583_v9  ;;  %v960_v8 = vld [vmem:[%s2068_s9] sm:$0xff]  ;;  %v1246_v9 = vld [vmem:[#allocation11] ss:$0 sm:$0xff]  ;;  %s1086_s2 = sshll.u32 %s460_s12, 4  ;;  %s2012_s2 = int_to_ptr.vmem [resolvable:$true] %s1086_s2 }
  0x7a   : > { %1311 = vmatprep.mubr.msk.f32.mxu0 %vm481_vm0, %v470_v4  ;;  %1329 = vmatpush3.msra.mxu0 %v719_v23  ;;  %s1662_s21 = scalar_lea.vmem %s2012_s2, 512  ;;  %p1669_p7 = scmp.lt.s32.totalorder %s2012_s2, %s1667_s13 }
  0x7b   : > { %1330 = vmatprep.subr.mxu0 %v718_v24  ;;  %1342 = vmatprep.subr.mxu1 %v831_v27  ;;  %p1663_p2 = scmp.ne.s32.totalorder %s2012_s2, %s1662_s21  ;;  %p1670_p5 = scmp.lt.s32.totalorder %s1668_s29, %s1662_s21 }
  0x7c   : > { %1331 = vmatpush3.msra.mxu0 %v718_v24 }
  0x7d   : > { %1312 = vmatmul.mubr.msk.f32.gmra.mxu0 %vm481_vm0, %v471_v5  ;;  %1332 = vmatprep.subr.mxu0 %v717_v25  ;;  %v963_v5 = vld [vmem:[%s2068_s9 + $0x18] sm:$0xff]  ;;  %p1664_p3 = pnand %p1663_p2, %p2095_p9  ;;  %p1671_p13 = por %p1670_p5, %p1669_p7 }
  0x7e   : > { %1333 = vmatpush3.msra.mxu0 %v717_v25 }
  0x7f   : > { %1334 = vmatprep.subr.mxu0 %v716_v26  ;;  %p1665_p4 = pneg %p1664_p3 }
  0x80   : > { %1335 = vmatpush3.msra.mxu0 %v716_v26 }
  0x81   : > { %1356 = vmatprep.subr.mxu0 %v963_v5  ;;  %p1672_p6 = pnand %p1671_p13, %p1665_p4 }
 0x139   : > { %v1310_v11 = vpop.f32.mrf.mxu0 }
 0x13a   : > { %v566_v12 = vadd.f32 %v1310_v11, %v1227_v10 }
 0x13b   : > { %v560_v13 = vpop.f32.mrf.mxu0 }
 0x13c   : > { %v561_v14 = vadd.f32 %v1227_v10, %v560_v13  ;;  %v580_v17 = vmax.f32 %v566_v12, 0.0 }
 0x13d   : > { %v1313_v15 = vpop.f32.mrf.mxu0 }
 0x13e   : > { %v579_v16 = vmax.f32 %v561_v14, 0.0  ;;  %v576_v18 = vadd.f32 %v1313_v15, %v1227_v10 }
 0x13f   : > { %v570_v19 = vpop.f32.mrf.mxu0 }
 0x140   : > { %v571_v20 = vadd.f32 %v1227_v10, %v570_v19  ;;  %1322 = vmatprep.mubr.msk.f32.mxu1 %vm594_vm1, %v579_v16  ;;  %v582_v22 = vmax.f32 %v576_v18, 0.0 }
 0x141   : > { %1323 = vmatmul.mubr.msk.f32.vlgmr.msra.gmra.mxu1 %vm594_vm1, %v580_v17 }
 0x142   : > { %v581_v21 = vmax.f32 %v571_v20, 0.0  ;;  %1343 = vmatpush3.msra.mxu1 %v831_v27 }
 0x143   : > { %1344 = vmatprep.subr.mxu1 %v830_v53 }
 0x144   : > { %1325 = vmatprep.mubr.msk.f32.mxu1 %vm594_vm1, %v581_v21  ;;  %1345 = vmatpush3.msra.mxu1 %v830_v53 }
 0x145   : > { %1326 = vmatmul.mubr.msk.f32.gmra.mxu1 %vm594_vm1, %v582_v22  ;;  %1346 = vmatprep.subr.mxu1 %v829_v54 }
 0x146   : > { %1347 = vmatpush3.msra.mxu1 %v829_v54 }
 0x147   : > { %1348 = vmatprep.subr.mxu1 %v828_v55 }
 0x148   : > { %1349 = vmatpush3.msra.mxu1 %v828_v55 }
 0x201   : > { %v1324_v29 = vpop.f32.mrf.mxu1 }
 0x202   : > { %v679_v30 = vadd.f32 %v1324_v29, %v1232_v28 }
 0x203   : > { %v673_v31 = vpop.f32.mrf.mxu1 }
 0x204   : > { %v1238_v32 = vmul.f32 -1.442695, %v679_v30  ;;  %v674_v33 = vadd.f32 %v1232_v28, %v673_v31 }
 0x205   : > { %v1327_v34 = vpop.f32.mrf.mxu1 }
 0x206   : > { %1474 = vpow2.f32 %v1238_v32  ;;  %v1237_v35 = vmul.f32 -1.442695, %v674_v33  ;;  %v689_v36 = vadd.f32 %v1327_v34, %v1232_v28  ;;  %v1255_v34 = vld [vmem:[%s2069_s10] ss:$0 sm:$0xff] }
 0x207   : > { %v683_v37 = vpop.f32.mrf.mxu1 }
 0x208   : > { %1476 = vpow2.f32 %v1237_v35  ;;  %v1240_v38 = vmul.f32 -1.442695, %v689_v36  ;;  %v684_v39 = vadd.f32 %v1232_v28, %v683_v37 }
 0x20a   : > { %1478 = vpow2.f32 %v1240_v38  ;;  %v1239_v40 = vmul.f32 -1.442695, %v684_v39 }
 0x20c   : > { %1480 = vpow2.f32 %v1239_v40 }
 0x213   : > { %v1475_v41 = vpop.eup %1474 }
 0x214   : > { %v705_v43 = vadd.f32 1.0, %v1475_v41 }
 0x215   : > { %v1477_v42 = vpop.eup %1476 }
 0x216   : > { %v704_v44 = vadd.f32 1.0, %v1477_v42 }
 0x217   : > { %v1479_v45 = vpop.eup %1478 }
 0x218   : > { %1482 = vrcp.f32 %v704_v44  ;;  %v707_v47 = vadd.f32 1.0, %v1479_v45 }
 0x219   : > { %v1481_v46 = vpop.eup %1480  ;;  %1484 = vrcp.f32 %v705_v43 }
 0x21a   : > { %v706_v48 = vadd.f32 1.0, %v1481_v46 }
 0x21c   : > { %1486 = vrcp.f32 %v706_v48 }
 0x21d   : > { %1488 = vrcp.f32 %v707_v47 }
 0x225   : > { %v1483_v49 = vpop.eup %1482 }
 0x226   : > { %v1485_v50 = vpop.eup %1484  ;;  %1336 = vmatprep.mubr.msk.f32.mxu0 %vm594_vm1, %v1483_v49 }
 0x227   : > { %1337 = vmatmul.mubr.msk.f32.vlgmr.msra.gmra.mxu0 %vm594_vm1, %v1485_v50 }
 0x228   : > { %1357 = vmatpush3.msra.mxu0 %v963_v5 }
 0x229   : > { %v1487_v51 = vpop.eup %1486  ;;  %1358 = vmatprep.subr.mxu0 %v962_v6 }
 0x22a   : > { %v1489_v52 = vpop.eup %1488  ;;  %1339 = vmatprep.mubr.msk.f32.mxu0 %vm594_vm1, %v1487_v51  ;;  %1359 = vmatpush3.msra.mxu0 %v962_v6 }
 0x22b   : > { %1340 = vmatmul.mubr.msk.f32.gmra.mxu0 %vm594_vm1, %v1489_v52  ;;  %1360 = vmatprep.subr.mxu0 %v961_v7 }
 0x22c   : > { %1361 = vmatpush3.msra.mxu0 %v961_v7 }
 0x22d   : > { %1362 = vmatprep.subr.mxu0 %v960_v8 }
 0x22e   : > { %1363 = vmatpush3.msra.mxu0 %v960_v8 }
 0x2e7   : > { %v1338_v57 = vpop.f32.mrf.mxu0 }
 0x2e8   : > { %v811_v58 = vadd.f32 %v1338_v57, %v1241_v56 }
 0x2e9   : > { %v805_v59 = vpop.f32.mrf.mxu0 }
 0x2ea   : > { %v806_v60 = vadd.f32 %v1241_v56, %v805_v59  ;;  %v825_v63 = vmax.f32 %v811_v58, 0.0 }
 0x2eb   : > { %v1341_v61 = vpop.f32.mrf.mxu0 }
 0x2ec   : > { %v824_v62 = vmax.f32 %v806_v60, 0.0  ;;  %v821_v0 = vadd.f32 %v1341_v61, %v1241_v56 }
 0x2ed   : > { %v815_v1 = vpop.f32.mrf.mxu0 }
 0x2ee   : > { %v816_v2 = vadd.f32 %v1241_v56, %v815_v1  ;;  %1350 = vmatprep.mubr.msk.f32.mxu1 %vm594_vm1, %v824_v62  ;;  %v827_v4 = vmax.f32 %v821_v0, 0.0 }
 0x2ef   : > { %1351 = vmatmul.mubr.msk.f32.vlgmr.msra.gmra.mxu1 %vm594_vm1, %v825_v63 }
 0x2f0   : > { %v826_v3 = vmax.f32 %v816_v2, 0.0 }
 0x2f2   : > { %1353 = vmatprep.mubr.msk.f32.mxu1 %vm594_vm1, %v826_v3 }
 0x2f3   : > { %1354 = vmatmul.mubr.msk.f32.gmra.mxu1 %vm594_vm1, %v827_v4 }
 0x3af   : > { %v1352_v10 = vpop.f32.mrf.mxu1 }
 0x3b0   : > { %v923_v11 = vadd.f32 %v1352_v10, %v1246_v9 }
 0x3b1   : > { %v917_v12 = vpop.f32.mrf.mxu1 }
 0x3b2   : > { %v1252_v13 = vmul.f32 -1.442695, %v923_v11  ;;  %v918_v14 = vadd.f32 %v1246_v9, %v917_v12 }
 0x3b3   : > { %v1355_v15 = vpop.f32.mrf.mxu1 }
 0x3b4   : > { %1490 = vpow2.f32 %v1252_v13  ;;  %v1251_v16 = vmul.f32 -1.442695, %v918_v14  ;;  %v933_v17 = vadd.f32 %v1355_v15, %v1246_v9 }
 0x3b5   : > { %v927_v18 = vpop.f32.mrf.mxu1 }
 0x3b6   : > { %1492 = vpow2.f32 %v1251_v16  ;;  %v1254_v19 = vmul.f32 -1.442695, %v933_v17  ;;  %v928_v20 = vadd.f32 %v1246_v9, %v927_v18 }
 0x3b8   : > { %1494 = vpow2.f32 %v1254_v19  ;;  %v1253_v21 = vmul.f32 -1.442695, %v928_v20 }
 0x3ba   : > { %1496 = vpow2.f32 %v1253_v21 }
 0x3c1   : > { %v1491_v22 = vpop.eup %1490 }
 0x3c2   : > { %v949_v24 = vadd.f32 1.0, %v1491_v22 }
 0x3c3   : > { %v1493_v23 = vpop.eup %1492 }
 0x3c4   : > { %v948_v25 = vadd.f32 1.0, %v1493_v23 }
 0x3c5   : > { %v1495_v26 = vpop.eup %1494 }
 0x3c6   : > { %1498 = vrcp.f32 %v948_v25  ;;  %v951_v28 = vadd.f32 1.0, %v1495_v26 }
 0x3c7   : > { %v1497_v27 = vpop.eup %1496  ;;  %1500 = vrcp.f32 %v949_v24 }
 0x3c8   : > { %v950_v29 = vadd.f32 1.0, %v1497_v27 }
 0x3ca   : > { %1502 = vrcp.f32 %v950_v29 }
 0x3cb   : > { %1504 = vrcp.f32 %v951_v28 }
 0x3d3   : > { %v1499_v30 = vpop.eup %1498 }
 0x3d4   : > { %v1501_v31 = vpop.eup %1500  ;;  %1364 = vmatprep.mubr.msk.f32.mxu0 %vm594_vm1, %v1499_v30 }
 0x3d5   : > { %1365 = vmatmul.mubr.msk.f32.vlgmr.msra.gmra.mxu0 %vm594_vm1, %v1501_v31 }
 0x3d7   : > { %v1503_v32 = vpop.eup %1502 }
 0x3d8   : > { %v1505_v33 = vpop.eup %1504  ;;  %1367 = vmatprep.mubr.msk.f32.mxu0 %vm594_vm1, %v1503_v32 }
 0x3d9   : > { %1368 = vmatmul.mubr.msk.f32.gmra.mxu0 %vm594_vm1, %v1505_v33 }
 0x495   : > { %v1366_v35 = vpop.f32.mrf.mxu0 }
 0x496   : > { %v1055_v36 = vadd.f32 %v1366_v35, %v1255_v34 }
 0x497   : > { %v1049_v37 = vpop.f32.mrf.mxu0 }
 0x498   : > { %1069 = vst [vmem:[%s460_s12 + $0x8] sm:$0xff] %v1055_v36  ;;  %v1050_v38 = vadd.f32 %v1255_v34, %v1049_v37 }
 0x499   : > { %v1369_v39 = vpop.f32.mrf.mxu0 }
 0x49a   : > { %1068 = vst [vmem:[%s460_s12] sm:$0xff] %v1050_v38  ;;  %v1065_v40 = vadd.f32 %v1369_v39, %v1255_v34 }
 0x49b   : > { %v1059_v41 = vpop.f32.mrf.mxu0 }
 0x49c   : > { %1071 = vst [vmem:[%s460_s12 + $0x18] sm:$0xff] %v1065_v40  ;;  %v1060_v42 = vadd.f32 %v1255_v34, %v1059_v41 }
 0x49e   : > { %1070 = vst [vmem:[%s460_s12 + $0x10] sm:$0xff] %v1060_v42 }
 0x49f   : > { %1675 = shalt.err (!%p1672_p6)
}
 0x4a0   : > { %s1676_s15 = scalar_lea.hbm %s2017_s30, 512  ;;  %s1680_s26 = scalar_lea.hbm %s2070_s11, 1024 }
 0x4a1   : > { %p1677_p10 = scmp.ne.s32.totalorder %s2017_s30, %s1676_s15  ;;  %p1681_p11 = scmp.lt.s32.totalorder %s2017_s30, %s2070_s11 }
 0x4a2   : > { %p1682_p0 = scmp.lt.s32.totalorder %s1680_s26, %s1676_s15 }
 0x4a3   : > { %p1678_p8 = pnand %p1677_p10, %p2095_p9 }
 0x4a4   : > { %p1683_p1 = por %p1682_p0, %p1681_p11 }
 0x4a5   : > { %p1679_p12 = pneg %p1678_p8 }
 0x4a7   : > { %p1684_p2 = pnand %p1683_p1, %p1679_p12 }
 0x4a9   : > { %1687 = shalt.err (!%p1684_p2)
}
 0x4aa   : > { %s1749_s16 = smov 128   ;;  %s1750_s25 = smov 8  }
 0x4ab   : > { %1394 = dma.vmem_to_hbm [thread:$0]  (%p2095_p9), %s2012_s2, 512, %s2017_s30, %s2019_s14, %s1749_s16, %s1749_s16, %s1750_s25  }
 0x4ac PF: > { %p1431_p3 = scmp.ge.s32.totalorder %s1738_s20, 2  ;;  %s1101_s21 = sand.u32 1, %s1726_s17  }
 0x4ad   : > { %p2096_p4 = scmp.ne.s32.totalorder %s2080_s28, 0  ;;  %s1102_s22 = scalar_lea.sflag [#allocation4], %s1101_s21 }
 0x4af   : > { %p1416_p7 = pnand %p1431_p3, %p2096_p4 }
 0x4b1   : > { %p1417_p5 = pneg %p1416_p7 }
 0x4b3   : > { %1721 = dma.done.wait (%p1417_p5), %s1102_s22, 512  }
 0x4b4   : > { %1723 = vsyncadd (%p1417_p5), %s1102_s22, 4294966784  ;;  %s2097_s13 = sld [smem:[#allocation19_spill]]  ;;  %p25_p13 = scmp.ge.s32.totalorder %s1836_s23, 4  }
 0x4b5   : > { %s2098_s19 = sld [smem:[#allocation20_spill]]  ;;  %s2099_s17 = smov %s1730_s18 }
 0x4b6   : > { %s2101_s20 = smov %s1836_s23  ;;  %27 = sbr.rel (!%p25_p13) target bundleno = 10 (0xa), region = 124 }
 0x4ba   : > { %s2100_s18 = smov %s2097_s13 }
 0x4bb   :  { %1107 = vsyncpa [#allocation3], 1 }
 0x4bc   :  { %1109 = vsyncpa [#allocation3 + $0x1], 1 }
 0x4bd   :  { %1110 = vsyncpa [#allocation6], 1 }
 0x4be   :  { %1111 = vsyncpa [#allocation9], 1 }
 0x4bf   :  { %1112 = vsyncpa [#allocation12], 1 }
 0x4c0   :  { %1113 = vsyncpa [#allocation4], 1 }
 0x4c1   :  { %1115 = vsyncpa [#allocation4 + $0x1], 1 }

// kernel: tpu_custom_call.1
= control target key start
LH: loop header
LB: loop body
LE: loop exit
PB: predicated region body
PF: predicated region fallthrough
CT: control target
= control target key end

     0   :  { %s2059_s0 = inlined_call_operand.vmem [shape: f32[64,16], index: 0, kind: input, shape index: {}]   ;;  %s2060_s1 = inlined_call_operand.hbm [shape: f32[16,32], index: 1, kind: input, shape index: {}]   ;;  %s2061_s2 = inlined_call_operand.hbm [shape: f32[1,32], index: 2, kind: input, shape index: {}]   ;;  %s2062_s3 = inlined_call_operand.vmem [shape: f32[32,32], index: 3, kind: input, shape index: {}]   ;;  %s2063_s4 = inlined_call_operand.hbm [shape: f32[1,32], index: 4, kind: input, shape index: {}]   ;;  %s2064_s5 = inlined_call_operand.vmem [shape: f32[32,32], index: 5, kind: input, shape index: {}]   ;;  %s2065_s6 = inlined_call_operand.hbm [shape: f32[1,32], index: 6, kind: input, shape index: {}]   ;;  %s2066_s7 = inlined_call_operand.hbm [shape: f32[32,32], index: 7, kind: input, shape index: {}]   ;;  %s2067_s8 = inlined_call_operand.hbm [shape: f32[1,32], index: 8, kind: input, shape index: {}]   ;;  %s2068_s9 = inlined_call_operand.vmem [shape: f32[32,128], index: 9, kind: input, shape index: {}]   ;;  %s2069_s10 = inlined_call_operand.vmem [shape: f32[1,128], index: 10, kind: input, shape index: {}]   ;;  %s2070_s11 = inlined_call_operand.hbm [shape: f32[64,128], index: 11, kind: output, shape index: {}]  }
   0x1   :  { %2075 = sst [smem:[#allocation21_spill]] %s2061_s2 }
   0x2   :  { %2076 = sst [smem:[#allocation22_spill]] %s2065_s6 }
   0x3   :  { %16 = vsyncpa [#allocation3], 0 }
   0x4   :  { %17 = vsyncpa [#allocation6], 0 }
   0x5   :  { %18 = vsyncpa [#allocation9], 0 }
   0x6   :  { %19 = vsyncpa [#allocation12], 0 }
   0x7   :  { %20 = vsyncpa [#allocation4], 0 }
   0x8   :  { %22 = vsyncpa [#allocation4 + $0x1], 0  ;;  %s1811_s17 = smov 0   ;;  %s1813_s18 = smov 0  }
   0x9   :  { %s1815_s19 = smov 0   ;;  %s1817_s20 = smov 0  }
   0xa LB: > { %2077 = sst [smem:[#allocation19_spill]] %s1734_s19  ;;  %s1832_s21 = sadd.s32 4294967295, %s1738_s20   ;;  %s1738_s20 = sphi %s1817_s20, %s2101_s20   ;;  %s1734_s19 = sphi %s1815_s19, %s2098_s19   ;;  %s1730_s18 = sphi %s1813_s18, %s2100_s18   ;;  %s1726_s17 = sphi %s1811_s17, %s2099_s17  }
   0xb   : > { %s1208_s22 = sadd.s32 4294967294, %s1738_s20   ;;  %s1836_s23 = sadd.s32 1, %s1738_s20  }
   0xc   : > { %s271_s24 = sadd.s32 1, %s1734_s19  ;;  %s268_s25 = ssub.s32 %s1738_s20, %s1836_s23 }
   0xd   : > { %p281_p0 = scmp.ne.s32.totalorder %s1734_s19, %s1730_s18  ;;  %p269_p1 = scmp.eq.s32.totalorder %s268_s25, 0 }
   0xe   : > { %p282_p2 = scmp.eq.s32.totalorder %s1832_s21, 1  ;;  %p287_p3 = scmp.ne.s32.totalorder %s1730_s18, %s1726_s17 }
   0xf   : > { %p288_p4 = scmp.eq.s32.totalorder %s1208_s22, 1  ;;  %p1209_p7 = scmp.ge.s32.totalorder %s1738_s20, 1 }
  0x10   : > { %s1847_s26 = scalar_select %p269_p1, %s1734_s19, %s271_s24  }
  0x11   : > { %p1849_p5 = por %p282_p2, %p281_p0  ;;  %p1853_p6 = por %p288_p4, %p287_p3 }
  0x12   : > { %2078 = sst [smem:[#allocation20_spill]] %s1847_s26  ;;  %p295_p8 = scmp.lt.s32.totalorder %s1738_s20, 3 }
  0x13   : > { %s2079_s27 = scalar_select %p1849_p5, 1, 0 }
  0x14   : > { %s2080_s28 = scalar_select %p1853_p6, 1, 0 }
  0x15   : > { %p2071_p9 = scmp.eq.s32.totalorder %s1832_s21, 0  ;;  %p1860_p10 = pnand %p1209_p7, %p295_p8 }
  0x16   : > { %s1740_s30 = smov [#allocation5]   ;;  %s1741_s13 = smov [#allocation8]  }
  0x17   : > { %s2081_s29 = scalar_select %p1860_p10, 1, 0 }
  0x18   : > { %s321_s12 = sshll.u32 %s1740_s30, 4  ;;  %p1396_p11 = pneg %p1860_p10  ;;  %s322_s12 = int_to_ptr.vmem [resolvable:$true] %s321_s12 }
  0x19   : > { %s349_s14 = sshll.u32 %s1741_s13, 4  ;;  %s1742_s16 = smov [#allocation2]   ;;  %s350_s14 = int_to_ptr.vmem [resolvable:$true] %s349_s14 }
  0x1a   : > { %p1868_p12 = pnand %p2071_p9, %p1396_p11  ;;  %s307_s22 = sshll.u32 %s1742_s16, 4  ;;  %s1872_s22 = int_to_ptr.vmem [resolvable:$true] %s307_s22 }
  0x1b   : > { %s1517_s25 = scalar_lea.vmem %s322_s12, 16  ;;  %s1524_s30 = scalar_lea.vmem %s322_s12, 32 }
  0x1c   : > { %p1876_p13 = pneg %p1868_p12  ;;  %p1518_p0 = scmp.ne.s32.totalorder %s322_s12, %s1517_s25 }
  0x1d   : > { %p1525_p3 = scmp.lt.s32.totalorder %s322_s12, %s322_s12  ;;  %p1526_p4 = scmp.lt.s32.totalorder %s1524_s30, %s1517_s25 }
  0x1e   : > { %p1520_p1 = pnand %p1518_p0, %p1876_p13 }
  0x1f   : > { %p1527_p7 = por %p1526_p4, %p1525_p3 }
  0x20   : > { %p1521_p2 = pneg %p1520_p1 }
  0x22   : > { %p1528_p8 = pnand %p1527_p7, %p1521_p2 }
  0x24   : > { %1531 = shalt.err (!%p1528_p8)
}
  0x25   : > { %s2084_s2 = sld [smem:[#allocation21_spill]]  ;;  %s1543_s26 = scalar_lea.vmem %s350_s14, 16 }
  0x26   : > { %p1544_p11 = scmp.ne.s32.totalorder %s350_s14, %s1543_s26  ;;  %s1550_s19 = scalar_lea.vmem %s350_s14, 32 }
  0x27   : > { %p1551_p0 = scmp.lt.s32.totalorder %s350_s14, %s350_s14  ;;  %p1552_p1 = scmp.lt.s32.totalorder %s1550_s19, %s1543_s26 }
  0x28   : > { %p1546_p9 = pnand %p1544_p11, %p1876_p13 }
  0x29   : > { %p1553_p5 = por %p1552_p1, %p1551_p0 }
  0x2a   : > { %p1547_p6 = pneg %p1546_p9 }
  0x2b   : > { %1402 = dma.hbm_to_vmem [thread:$0]  (!%p1868_p12), %s2084_s2, 16, %s322_s12, [#allocation6]  }
  0x2c   : > { %p1554_p10 = pnand %p1553_p5, %p1547_p6 }
  0x2e   : > { %1557 = shalt.err (!%p1554_p10)
}
  0x2f   : > { %s2085_s6 = sld [smem:[#allocation22_spill]]  ;;  %s1569_s12 = scalar_lea.vmem %s1872_s22, 256 }
  0x30   : > { %p1570_p2 = scmp.ne.s32.totalorder %s1872_s22, %s1569_s12  ;;  %p1577_p4 = scmp.lt.s32.totalorder %s1872_s22, %s1872_s22 }
  0x31   : > { %p1578_p7 = scmp.lt.s32.totalorder %s1569_s12, %s1569_s12 }
  0x32   : > { %p1572_p9 = pnand %p1570_p2, %p1876_p13 }
  0x33   : > { %p1579_p5 = por %p1578_p7, %p1577_p4 }
  0x34   : > { %p1573_p3 = pneg %p1572_p9 }
  0x35   : > { %1408 = dma.hbm_to_vmem [thread:$0]  (!%p1868_p12), %s2085_s6, 16, %s350_s14, [#allocation9]  }
  0x36   : > { %p1580_p6 = pnand %p1579_p5, %p1573_p3 }
  0x38   : > { %1583 = shalt.err (!%p1580_p6)
}
  0x39   : > { %s1743_s19 = smov 128   ;;  %s1744_s26 = smov 8  }
  0x3a   : > { %1399 = dma.hbm_to_vmem [thread:$0]  (!%p1868_p12), %s2060_s1, 256, %s1872_s22, [#allocation3], %s1743_s19, %s1743_s19, %s1744_s26  }
  0x3b   : > { %s1745_s16 = smov [#allocation7]   ;;  %s1746_s30 = smov [#allocation10]  }
  0x3c   : > { %s335_s25 = sshll.u32 %s1745_s16, 4  ;;  %s359_s12 = sshll.u32 %s1746_s30, 4  ;;  %s336_s25 = int_to_ptr.vmem [resolvable:$true] %s335_s25  ;;  %s360_s12 = int_to_ptr.vmem [resolvable:$true] %s359_s12 }
  0x3d   : > { %s1595_s2 = scalar_lea.vmem %s336_s25, 16  ;;  %s1602_s6 = scalar_lea.vmem %s336_s25, 32 }
  0x3e   : > { %p1596_p10 = scmp.ne.s32.totalorder %s336_s25, %s1595_s2  ;;  %p1603_p0 = scmp.lt.s32.totalorder %s336_s25, %s336_s25 }
  0x3f   : > { %p1604_p1 = scmp.lt.s32.totalorder %s1602_s6, %s1595_s2 }
  0x40   : > { %p1598_p8 = pnand %p1596_p10, %p1876_p13 }
  0x41   : > { %p1605_p2 = por %p1604_p1, %p1603_p0 }
  0x42   : > { %p1599_p11 = pneg %p1598_p8 }
  0x44   : > { %p1606_p9 = pnand %p1605_p2, %p1599_p11 }
  0x46   : > { %1609 = shalt.err (!%p1606_p9)
}
  0x47   : > { %1405 = dma.hbm_to_vmem [thread:$0]  (!%p1868_p12), %s2063_s4, 16, %s336_s25, [#allocation6]  }
  0x48   : > { %s1621_s13 = scalar_lea.vmem %s360_s12, 512  ;;  %p1629_p5 = scmp.lt.s32.totalorder %s360_s12, %s360_s12 }
  0x49   : > { %p1622_p3 = scmp.ne.s32.totalorder %s360_s12, %s1621_s13  ;;  %p1630_p6 = scmp.lt.s32.totalorder %s1621_s13, %s1621_s13 }
  0x4b   : > { %p1624_p4 = pnand %p1622_p3, %p1876_p13  ;;  %p1631_p10 = por %p1630_p6, %p1629_p5 }
  0x4d   : > { %p1625_p7 = pneg %p1624_p4 }
  0x4f   : > { %p1632_p8 = pnand %p1631_p10, %p1625_p7 }
  0x51   : > { %1635 = shalt.err (!%p1632_p8)
}
  0x52   : > { %1411 = dma.hbm_to_vmem [thread:$0]  (!%p1868_p12), %s2066_s7, 512, %s360_s12, [#allocation9], %s1743_s19, %s1743_s19, %s1744_s26  }
  0x53   : > { %s1747_s16 = smov [#allocation11]  }
  0x54   : > { %s373_s25 = sshll.u32 %s1747_s16, 4  ;;  %s374_s25 = int_to_ptr.vmem [resolvable:$true] %s373_s25 }
  0x55   : > { %s1647_s30 = scalar_lea.vmem %s374_s25, 16  ;;  %s1654_s14 = scalar_lea.vmem %s374_s25, 32 }
  0x56   : > { %p1648_p11 = scmp.ne.s32.totalorder %s374_s25, %s1647_s30  ;;  %p1655_p2 = scmp.lt.s32.totalorder %s374_s25, %s374_s25 }
  0x57   : > { %p1656_p9 = scmp.lt.s32.totalorder %s1654_s14, %s1647_s30 }
  0x58   : > { %p1650_p0 = pnand %p1648_p11, %p1876_p13 }
  0x59   : > { %p1657_p3 = por %p1656_p9, %p1655_p2 }
  0x5a   : > { %p1651_p1 = pneg %p1650_p0 }
  0x5c   : > { %p1658_p4 = pnand %p1657_p3, %p1651_p1 }
  0x5e   : > { %1661 = shalt.err (!%p1658_p4)
}
  0x5f   : > { %1414 = dma.hbm_to_vmem [thread:$0]  (!%p1868_p12), %s2067_s8, 16, %s374_s25, [#allocation12]  }
  0x60   : > { %p2086_p7 = scmp.ne.s32.totalorder %s2081_s29, 0 }
  0x61   : > { %p2087_p5 = scmp.eq.s32.totalorder (!%p2086_p7), %s1832_s21, 0 }
  0x62   : > { %401 = sbr.rel (%p2086_p7) target bundleno = 1196 (0x4ac), region = 64 }
  0x67   : > { %1705 = dma.done.wait (%p2087_p5), [#allocation3], 256   ;;  %p2088_p13 = pmov %p2087_p5 }
  0x68   : > { %p2089_p6 = pmov %p2087_p5 }
  0x69   : > { %1707 = vsyncadd (%p2088_p13), [#allocation3], 4294967040 }
  0x6a   : > { %1709 = dma.done.wait (%p2089_p6), [#allocation6], 32   ;;  %p2090_p10 = pmov %p2087_p5 }
  0x6b   : > { %p2091_p8 = pmov %p2087_p5 }
  0x6c   : > { %1711 = vsyncadd (%p2090_p10), [#allocation6], 4294967264 }
  0x6d   : > { %1713 = dma.done.wait (%p2091_p8), [#allocation9], 528   ;;  %p2092_p12 = pmov %p2087_p5 }
  0x6e   : > { %p2093_p11 = pmov %p2087_p5 }
  0x6f   : > { %1715 = vsyncadd (%p2092_p12), [#allocation9], 4294966768 }
  0x70   : > { %1717 = dma.done.wait (%p2093_p11), [#allocation12], 16   ;;  %p2094_p0 = pmov %p2087_p5 }
  0x71   : > { %s1225_s29 = sshll.u32 %s1832_s21, 2  ;;  %vm481_vm0 = vcmask 130048   ;;  %v473_v0 = vld [vmem:[#allocation2 + $0x8] sm:$0xff]  ;;  %v472_v1 = vld [vmem:[#allocation2] sm:$0xff]  ;;  %v586_v6 = vld [vmem:[%s2062_s3 + $0x18] sm:$0xff]  ;;  %vm594_vm1 = vcmask 261120  }
  0x72   : > { %1719 = vsyncadd (%p2094_p0), [#allocation12], 4294967280  ;;  %p462_p1 = scmp.lt.s32.totalorder %s1225_s29, 7  ;;  %1304 = vmatprep.subr.mxu0 %v473_v0  ;;  %1314 = vmatprep.subr.mxu1 %v586_v6  ;;  %v585_v7 = vld [vmem:[%s2062_s3 + $0x10] sm:$0xff]  ;;  %v584_v8 = vld [vmem:[%s2062_s3 + $0x8] sm:$0xff]  ;;  %s1265_s6 = sshll.u32 %s1832_s21, 9 }
  0x73   : > { %1305 = vmatpush3.msra.mxu0 %v473_v0  ;;  %1315 = vmatpush3.msra.mxu1 %v586_v6  ;;  %v583_v9 = vld [vmem:[%s2062_s3] sm:$0xff]  ;;  %v1227_v10 = vld [vmem:[#allocation5] ss:$0 sm:$0xff]  ;;  %v719_v23 = vld [vmem:[%s2064_s5 + $0x18] sm:$0xff]  ;;  %s2017_s30 = scalar_lea.hbm %s2070_s11, %s1265_s6  ;;  %p2095_p9 = scmp.ne.s32.totalorder %s2079_s27, 0 }
  0x74   : > { %s2103_s29 = smov (!%p462_p1, %s1225_s29), 7  ;;  %1306 = vmatprep.subr.mxu0 %v472_v1  ;;  %1316 = vmatprep.subr.mxu1 %v585_v7  ;;  %v718_v24 = vld [vmem:[%s2064_s5 + $0x10] sm:$0xff]  ;;  %v717_v25 = vld [vmem:[%s2064_s5 + $0x8] sm:$0xff]  ;;  %v716_v26 = vld [vmem:[%s2064_s5] sm:$0xff]  ;;  %s1748_s22 = smov [#allocation13]  }
  0x75   : > { %s1226_s15 = sshll.u32 %s2103_s29, 3  ;;  %1307 = vmatpush3.msra.mxu0 %v472_v1  ;;  %1317 = vmatpush3.msra.mxu1 %v585_v7  ;;  %v831_v27 = vld [vmem:[#allocation10 + $0x18] sm:$0xff]  ;;  %v830_v53 = vld [vmem:[#allocation10 + $0x10] sm:$0xff]  ;;  %v829_v54 = vld [vmem:[#allocation10 + $0x8] sm:$0xff]  ;;  %s1666_s13 = sshll.u32 %s1748_s22, 4  ;;  %s1667_s13 = int_to_ptr.vmem [resolvable:$false] %s1666_s13 }
  0x76   : > { %s465_s26 = scalar_lea.vmem %s2059_s0, %s1226_s15  ;;  %1318 = vmatprep.subr.mxu1 %v584_v8  ;;  %1328 = vmatprep.subr.mxu0 %v719_v23  ;;  %v1232_v28 = vld [vmem:[#allocation7] ss:$0 sm:$0xff]  ;;  %v828_v55 = vld [vmem:[#allocation10] sm:$0xff]  ;;  %v1241_v56 = vld [vmem:[#allocation8] ss:$0 sm:$0xff]  ;;  %s458_s15 = sand.u32 1, %s1730_s18  }
  0x77   : > { %v468_v2 = vld [vmem:[%s465_s26] sm:$0xff]  ;;  %v469_v3 = vld [vmem:[%s465_s26 + $0x8] sm:$0xff]  ;;  %v470_v4 = vld [vmem:[%s465_s26 + $0x10] sm:$0xff]  ;;  %1319 = vmatpush3.msra.mxu1 %v584_v8  ;;  %s1224_s24 = sshll.u32 %s458_s15, 5  ;;  %s2019_s14 = scalar_lea.sflag [#allocation4], %s458_s15 }
  0x78   : > { %1308 = vmatprep.mubr.msk.f32.mxu0 %vm481_vm0, %v468_v2  ;;  %v471_v5 = vld [vmem:[%s465_s26 + $0x18] sm:$0xff]  ;;  %1320 = vmatprep.subr.mxu1 %v583_v9  ;;  %v962_v6 = vld [vmem:[%s2068_s9 + $0x10] sm:$0xff]  ;;  %v961_v7 = vld [vmem:[%s2068_s9 + $0x8] sm:$0xff]  ;;  %s460_s12 = scalar_lea.vmem [#allocation13], %s1224_s24  ;;  %s1668_s29 = scalar_lea.vmem %s1667_s13, 1024 }
  0x79   : > { %1309 = vmatmul.mubr.msk.f32.vlgmr.msra.gmra.mxu0 %vm481_vm0, %v469_v3  ;;  %1321 = vmatpush3.msra.mxu1 %v583_v9  ;;  %v960_v8 = vld [vmem:[%s2068_s9] sm:$0xff]  ;;  %v1246_v9 = vld [vmem:[#allocation11] ss:$0 sm:$0xff]  ;;  %s1086_s2 = sshll.u32 %s460_s12, 4  ;;  %s2012_s2 = int_to_ptr.vmem [resolvable:$true] %s1086_s2 }
  0x7a   : > { %1311 = vmatprep.mubr.msk.f32.mxu0 %vm481_vm0, %v470_v4  ;;  %1329 = vmatpush3.msra.mxu0 %v719_v23  ;;  %s1662_s21 = scalar_lea.vmem %s2012_s2, 512  ;;  %p1669_p7 = scmp.lt.s32.totalorder %s2012_s2, %s1667_s13 }
  0x7b   : > { %1330 = vmatprep.subr.mxu0 %v718_v24  ;;  %1342 = vmatprep.subr.mxu1 %v831_v27  ;;  %p1663_p2 = scmp.ne.s32.totalorder %s2012_s2, %s1662_s21  ;;  %p1670_p5 = scmp.lt.s32.totalorder %s1668_s29, %s1662_s21 }
  0x7c   : > { %1331 = vmatpush3.msra.mxu0 %v718_v24 }
  0x7d   : > { %1312 = vmatmul.mubr.msk.f32.gmra.mxu0 %vm481_vm0, %v471_v5  ;;  %1332 = vmatprep.subr.mxu0 %v717_v25  ;;  %v963_v5 = vld [vmem:[%s2068_s9 + $0x18] sm:$0xff]  ;;  %p1664_p3 = pnand %p1663_p2, %p2095_p9  ;;  %p1671_p13 = por %p1670_p5, %p1669_p7 }
  0x7e   : > { %1333 = vmatpush3.msra.mxu0 %v717_v25 }
  0x7f   : > { %1334 = vmatprep.subr.mxu0 %v716_v26  ;;  %p1665_p4 = pneg %p1664_p3 }
  0x80   : > { %1335 = vmatpush3.msra.mxu0 %v716_v26 }
  0x81   : > { %1356 = vmatprep.subr.mxu0 %v963_v5  ;;  %p1672_p6 = pnand %p1671_p13, %p1665_p4 }
 0x139   : > { %v1310_v11 = vpop.f32.mrf.mxu0 }
 0x13a   : > { %v566_v12 = vadd.f32 %v1310_v11, %v1227_v10 }
 0x13b   : > { %v560_v13 = vpop.f32.mrf.mxu0 }
 0x13c   : > { %v561_v14 = vadd.f32 %v1227_v10, %v560_v13  ;;  %v580_v17 = vmax.f32 %v566_v12, 0.0 }
 0x13d   : > { %v1313_v15 = vpop.f32.mrf.mxu0 }
 0x13e   : > { %v579_v16 = vmax.f32 %v561_v14, 0.0  ;;  %v576_v18 = vadd.f32 %v1313_v15, %v1227_v10 }
 0x13f   : > { %v570_v19 = vpop.f32.mrf.mxu0 }
 0x140   : > { %v571_v20 = vadd.f32 %v1227_v10, %v570_v19  ;;  %1322 = vmatprep.mubr.msk.f32.mxu1 %vm594_vm1, %v579_v16  ;;  %v582_v22 = vmax.f32 %v576_v18, 0.0 }
 0x141   : > { %1323 = vmatmul.mubr.msk.f32.vlgmr.msra.gmra.mxu1 %vm594_vm1, %v580_v17 }
 0x142   : > { %v581_v21 = vmax.f32 %v571_v20, 0.0  ;;  %1343 = vmatpush3.msra.mxu1 %v831_v27 }
 0x143   : > { %1344 = vmatprep.subr.mxu1 %v830_v53 }
 0x144   : > { %1325 = vmatprep.mubr.msk.f32.mxu1 %vm594_vm1, %v581_v21  ;;  %1345 = vmatpush3.msra.mxu1 %v830_v53 }
 0x145   : > { %1326 = vmatmul.mubr.msk.f32.gmra.mxu1 %vm594_vm1, %v582_v22  ;;  %1346 = vmatprep.subr.mxu1 %v829_v54 }
 0x146   : > { %1347 = vmatpush3.msra.mxu1 %v829_v54 }
 0x147   : > { %1348 = vmatprep.subr.mxu1 %v828_v55 }
 0x148   : > { %1349 = vmatpush3.msra.mxu1 %v828_v55 }
 0x201   : > { %v1324_v29 = vpop.f32.mrf.mxu1 }
 0x202   : > { %v679_v30 = vadd.f32 %v1324_v29, %v1232_v28 }
 0x203   : > { %v673_v31 = vpop.f32.mrf.mxu1 }
 0x204   : > { %v1238_v32 = vmul.f32 -1.442695, %v679_v30  ;;  %v674_v33 = vadd.f32 %v1232_v28, %v673_v31 }
 0x205   : > { %v1327_v34 = vpop.f32.mrf.mxu1 }
 0x206   : > { %1474 = vpow2.f32 %v1238_v32  ;;  %v1237_v35 = vmul.f32 -1.442695, %v674_v33  ;;  %v689_v36 = vadd.f32 %v1327_v34, %v1232_v28  ;;  %v1255_v34 = vld [vmem:[%s2069_s10] ss:$0 sm:$0xff] }
 0x207   : > { %v683_v37 = vpop.f32.mrf.mxu1 }
 0x208   : > { %1476 = vpow2.f32 %v1237_v35  ;;  %v1240_v38 = vmul.f32 -1.442695, %v689_v36  ;;  %v684_v39 = vadd.f32 %v1232_v28, %v683_v37 }
 0x20a   : > { %1478 = vpow2.f32 %v1240_v38  ;;  %v1239_v40 = vmul.f32 -1.442695, %v684_v39 }
 0x20c   : > { %1480 = vpow2.f32 %v1239_v40 }
 0x213   : > { %v1475_v41 = vpop.eup %1474 }
 0x214   : > { %v705_v43 = vadd.f32 1.0, %v1475_v41 }
 0x215   : > { %v1477_v42 = vpop.eup %1476 }
 0x216   : > { %v704_v44 = vadd.f32 1.0, %v1477_v42 }
 0x217   : > { %v1479_v45 = vpop.eup %1478 }
 0x218   : > { %1482 = vrcp.f32 %v704_v44  ;;  %v707_v47 = vadd.f32 1.0, %v1479_v45 }
 0x219   : > { %v1481_v46 = vpop.eup %1480  ;;  %1484 = vrcp.f32 %v705_v43 }
 0x21a   : > { %v706_v48 = vadd.f32 1.0, %v1481_v46 }
 0x21c   : > { %1486 = vrcp.f32 %v706_v48 }
 0x21d   : > { %1488 = vrcp.f32 %v707_v47 }
 0x225   : > { %v1483_v49 = vpop.eup %1482 }
 0x226   : > { %v1485_v50 = vpop.eup %1484  ;;  %1336 = vmatprep.mubr.msk.f32.mxu0 %vm594_vm1, %v1483_v49 }
 0x227   : > { %1337 = vmatmul.mubr.msk.f32.vlgmr.msra.gmra.mxu0 %vm594_vm1, %v1485_v50 }
 0x228   : > { %1357 = vmatpush3.msra.mxu0 %v963_v5 }
 0x229   : > { %v1487_v51 = vpop.eup %1486  ;;  %1358 = vmatprep.subr.mxu0 %v962_v6 }
 0x22a   : > { %v1489_v52 = vpop.eup %1488  ;;  %1339 = vmatprep.mubr.msk.f32.mxu0 %vm594_vm1, %v1487_v51  ;;  %1359 = vmatpush3.msra.mxu0 %v962_v6 }
 0x22b   : > { %1340 = vmatmul.mubr.msk.f32.gmra.mxu0 %vm594_vm1, %v1489_v52  ;;  %1360 = vmatprep.subr.mxu0 %v961_v7 }
 0x22c   : > { %1361 = vmatpush3.msra.mxu0 %v961_v7 }
 0x22d   : > { %1362 = vmatprep.subr.mxu0 %v960_v8 }
 0x22e   : > { %1363 = vmatpush3.msra.mxu0 %v960_v8 }
 0x2e7   : > { %v1338_v57 = vpop.f32.mrf.mxu0 }
 0x2e8   : > { %v811_v58 = vadd.f32 %v1338_v57, %v1241_v56 }
 0x2e9   : > { %v805_v59 = vpop.f32.mrf.mxu0 }
 0x2ea   : > { %v806_v60 = vadd.f32 %v1241_v56, %v805_v59  ;;  %v825_v63 = vmax.f32 %v811_v58, 0.0 }
 0x2eb   : > { %v1341_v61 = vpop.f32.mrf.mxu0 }
 0x2ec   : > { %v824_v62 = vmax.f32 %v806_v60, 0.0  ;;  %v821_v0 = vadd.f32 %v1341_v61, %v1241_v56 }
 0x2ed   : > { %v815_v1 = vpop.f32.mrf.mxu0 }
 0x2ee   : > { %v816_v2 = vadd.f32 %v1241_v56, %v815_v1  ;;  %1350 = vmatprep.mubr.msk.f32.mxu1 %vm594_vm1, %v824_v62  ;;  %v827_v4 = vmax.f32 %v821_v0, 0.0 }
 0x2ef   : > { %1351 = vmatmul.mubr.msk.f32.vlgmr.msra.gmra.mxu1 %vm594_vm1, %v825_v63 }
 0x2f0   : > { %v826_v3 = vmax.f32 %v816_v2, 0.0 }
 0x2f2   : > { %1353 = vmatprep.mubr.msk.f32.mxu1 %vm594_vm1, %v826_v3 }
 0x2f3   : > { %1354 = vmatmul.mubr.msk.f32.gmra.mxu1 %vm594_vm1, %v827_v4 }
 0x3af   : > { %v1352_v10 = vpop.f32.mrf.mxu1 }
 0x3b0   : > { %v923_v11 = vadd.f32 %v1352_v10, %v1246_v9 }
 0x3b1   : > { %v917_v12 = vpop.f32.mrf.mxu1 }
 0x3b2   : > { %v1252_v13 = vmul.f32 -1.442695, %v923_v11  ;;  %v918_v14 = vadd.f32 %v1246_v9, %v917_v12 }
 0x3b3   : > { %v1355_v15 = vpop.f32.mrf.mxu1 }
 0x3b4   : > { %1490 = vpow2.f32 %v1252_v13  ;;  %v1251_v16 = vmul.f32 -1.442695, %v918_v14  ;;  %v933_v17 = vadd.f32 %v1355_v15, %v1246_v9 }
 0x3b5   : > { %v927_v18 = vpop.f32.mrf.mxu1 }
 0x3b6   : > { %1492 = vpow2.f32 %v1251_v16  ;;  %v1254_v19 = vmul.f32 -1.442695, %v933_v17  ;;  %v928_v20 = vadd.f32 %v1246_v9, %v927_v18 }
 0x3b8   : > { %1494 = vpow2.f32 %v1254_v19  ;;  %v1253_v21 = vmul.f32 -1.442695, %v928_v20 }
 0x3ba   : > { %1496 = vpow2.f32 %v1253_v21 }
 0x3c1   : > { %v1491_v22 = vpop.eup %1490 }
 0x3c2   : > { %v949_v24 = vadd.f32 1.0, %v1491_v22 }
 0x3c3   : > { %v1493_v23 = vpop.eup %1492 }
 0x3c4   : > { %v948_v25 = vadd.f32 1.0, %v1493_v23 }
 0x3c5   : > { %v1495_v26 = vpop.eup %1494 }
 0x3c6   : > { %1498 = vrcp.f32 %v948_v25  ;;  %v951_v28 = vadd.f32 1.0, %v1495_v26 }
 0x3c7   : > { %v1497_v27 = vpop.eup %1496  ;;  %1500 = vrcp.f32 %v949_v24 }
 0x3c8   : > { %v950_v29 = vadd.f32 1.0, %v1497_v27 }
 0x3ca   : > { %1502 = vrcp.f32 %v950_v29 }
 0x3cb   : > { %1504 = vrcp.f32 %v951_v28 }
 0x3d3   : > { %v1499_v30 = vpop.eup %1498 }
 0x3d4   : > { %v1501_v31 = vpop.eup %1500  ;;  %1364 = vmatprep.mubr.msk.f32.mxu0 %vm594_vm1, %v1499_v30 }
 0x3d5   : > { %1365 = vmatmul.mubr.msk.f32.vlgmr.msra.gmra.mxu0 %vm594_vm1, %v1501_v31 }
 0x3d7   : > { %v1503_v32 = vpop.eup %1502 }
 0x3d8   : > { %v1505_v33 = vpop.eup %1504  ;;  %1367 = vmatprep.mubr.msk.f32.mxu0 %vm594_vm1, %v1503_v32 }
 0x3d9   : > { %1368 = vmatmul.mubr.msk.f32.gmra.mxu0 %vm594_vm1, %v1505_v33 }
 0x495   : > { %v1366_v35 = vpop.f32.mrf.mxu0 }
 0x496   : > { %v1055_v36 = vadd.f32 %v1366_v35, %v1255_v34 }
 0x497   : > { %v1049_v37 = vpop.f32.mrf.mxu0 }
 0x498   : > { %1069 = vst [vmem:[%s460_s12 + $0x8] sm:$0xff] %v1055_v36  ;;  %v1050_v38 = vadd.f32 %v1255_v34, %v1049_v37 }
 0x499   : > { %v1369_v39 = vpop.f32.mrf.mxu0 }
 0x49a   : > { %1068 = vst [vmem:[%s460_s12] sm:$0xff] %v1050_v38  ;;  %v1065_v40 = vadd.f32 %v1369_v39, %v1255_v34 }
 0x49b   : > { %v1059_v41 = vpop.f32.mrf.mxu0 }
 0x49c   : > { %1071 = vst [vmem:[%s460_s12 + $0x18] sm:$0xff] %v1065_v40  ;;  %v1060_v42 = vadd.f32 %v1255_v34, %v1059_v41 }
 0x49e   : > { %1070 = vst [vmem:[%s460_s12 + $0x10] sm:$0xff] %v1060_v42 }
 0x49f   : > { %1675 = shalt.err (!%p1672_p6)
}
 0x4a0   : > { %s1676_s15 = scalar_lea.hbm %s2017_s30, 512  ;;  %s1680_s26 = scalar_lea.hbm %s2070_s11, 1024 }
 0x4a1   : > { %p1677_p10 = scmp.ne.s32.totalorder %s2017_s30, %s1676_s15  ;;  %p1681_p11 = scmp.lt.s32.totalorder %s2017_s30, %s2070_s11 }
 0x4a2   : > { %p1682_p0 = scmp.lt.s32.totalorder %s1680_s26, %s1676_s15 }
 0x4a3   : > { %p1678_p8 = pnand %p1677_p10, %p2095_p9 }
 0x4a4   : > { %p1683_p1 = por %p1682_p0, %p1681_p11 }
 0x4a5   : > { %p1679_p12 = pneg %p1678_p8 }
 0x4a7   : > { %p1684_p2 = pnand %p1683_p1, %p1679_p12 }
 0x4a9   : > { %1687 = shalt.err (!%p1684_p2)
}
 0x4aa   : > { %s1749_s16 = smov 128   ;;  %s1750_s25 = smov 8  }
 0x4ab   : > { %1394 = dma.vmem_to_hbm [thread:$0]  (%p2095_p9), %s2012_s2, 512, %s2017_s30, %s2019_s14, %s1749_s16, %s1749_s16, %s1750_s25  }
 0x4ac PF: > { %p1431_p3 = scmp.ge.s32.totalorder %s1738_s20, 2  ;;  %s1101_s21 = sand.u32 1, %s1726_s17  }
 0x4ad   : > { %p2096_p4 = scmp.ne.s32.totalorder %s2080_s28, 0  ;;  %s1102_s22 = scalar_lea.sflag [#allocation4], %s1101_s21 }
 0x4af   : > { %p1416_p7 = pnand %p1431_p3, %p2096_p4 }
 0x4b1   : > { %p1417_p5 = pneg %p1416_p7 }
 0x4b3   : > { %1721 = dma.done.wait (%p1417_p5), %s1102_s22, 512  }
 0x4b4   : > { %1723 = vsyncadd (%p1417_p5), %s1102_s22, 4294966784  ;;  %s2097_s13 = sld [smem:[#allocation19_spill]]  ;;  %p25_p13 = scmp.ge.s32.totalorder %s1836_s23, 4  }
 0x4b5   : > { %s2098_s19 = sld [smem:[#allocation20_spill]]  ;;  %s2099_s17 = smov %s1730_s18 }
 0x4b6   : > { %s2101_s20 = smov %s1836_s23  ;;  %27 = sbr.rel (!%p25_p13) target bundleno = 10 (0xa), region = 124 }
 0x4ba   : > { %s2100_s18 = smov %s2097_s13 }
 0x4bb   :  { %1107 = vsyncpa [#allocation3], 1 }
 0x4bc   :  { %1109 = vsyncpa [#allocation3 + $0x1], 1 }
 0x4bd   :  { %1110 = vsyncpa [#allocation6], 1 }
 0x4be   :  { %1111 = vsyncpa [#allocation9], 1 }
 0x4bf   :  { %1112 = vsyncpa [#allocation12], 1 }
 0x4c0   :  { %1113 = vsyncpa [#allocation4], 1 }
 0x4c1   :  { %1115 = vsyncpa [#allocation4 + $0x1], 1 }

</bundles_post_ra>
